<compile_context>
chip_gen: v7x
topology: tpu7x:2x2x1
jax: 0.10.0
libtpu: 0.0.40
codegen_flags: <defaults>
</compile_context>

<pallas_src>
import jax
import jax.numpy as jnp
import numpy as np
from jax.experimental import pallas as pl
from jax.experimental.pallas import tpu as pltpu

# ---------------------------------------------------------------------------
# Static sizes / slab layout.
# ---------------------------------------------------------------------------
L = 11            # length of the code strings
PW = 16           # per-branch padded position width (positions 1..11 valid)
ROWS = 2 * PW     # 32 rows: branch-1 = 0..15, branch-2 = 16..31
LANES = 128       # slab lane width

C1, C2, C3 = 16, 32, 64      # conv channel counts
F1, F2 = 128, 64             # fc1 / fc2 widths

# name -> (rows, cols) of each block inside the packed parameter slab
_PARAM_BLOCKS = (
    ("c1w", (3 * 1, C1)),  ("c1b", (1, C1)),
    ("c2w", (3 * C1, C2)), ("c2b", (1, C2)),
    ("c3w", (3 * C2, C3)), ("c3b", (1, C3)),
    ("fc1w", (L * C3, F1)), ("fc1b", (1, F1)),   # fc1w row = (pos)*C3 + channel
    ("fc2w", (F1, F2)),    ("fc2b", (1, F2)),
    ("fc3w", (1, F2)),     ("fc3b", (1, 1)),
    ("attw", (1, 2 * F2)), ("attb", (1, 1)),
)
_SHAPES = dict(_PARAM_BLOCKS)
_OFFS = {}
_row = 0
for _name, (_r, _c) in _PARAM_BLOCKS:
    _OFFS[_name] = _row                   # every block starts 8-row aligned
    _row += -(-_r // 8) * 8
SLAB_ROWS = _row                          # 1056 rows * 128 lanes * 4 B ~= 528 KiB


def process_code(code: str) -> jnp.ndarray:
    vals = [int(c) if c.isdigit() else ord(c.upper()) - ord("A") + 10 for c in code]
    return jnp.asarray(vals, dtype=jnp.float32)


# ---------------------------------------------------------------------------
# Pallas kernel: whole forward pass (both branches + attention + head).
# ---------------------------------------------------------------------------
def _siamese_kernel(x_ref, p_ref, out_ref):
    f32 = jnp.float32

    def getp(name):
        r0 = _OFFS[name]
        nr, nc = _SHAPES[name]
        return p_ref[r0:r0 + nr, 0:nc]

    # Validity mask over the 32 padded position rows (local positions 1..11).
    row = jax.lax.broadcasted_iota(jnp.int32, (ROWS, 1), 0)
    rloc = row % PW
    mask = jnp.logical_and(rloc >= 1, rloc <= L).astype(f32)       # (32, 1)

    def conv_layer(hs, wname, bname):
        # hs: (32, 3*C_in) = [h(p-1) | h(p) | h(p+1)] stacked along lanes.
        w = getp(wname)                                            # (3*C_in, C_out)
        b = getp(bname)                                            # (1, C_out)
        y = jnp.dot(hs, w, preferred_element_type=f32)             # (32, C_out)
        return jnp.maximum(y + b, 0.0) * mask                      # zero halo rows

    def stack_taps(h):
        # h: (32, C) with zero halo rows -> fused-tap operand (32, 3*C).
        z = jnp.zeros((1, h.shape[1]), f32)
        h_m1 = jnp.concatenate([z, h[:-1, :]], axis=0)             # row p = h[p-1]
        h_p1 = jnp.concatenate([h[1:, :], z], axis=0)              # row p = h[p+1]
        return jnp.concatenate([h_m1, h, h_p1], axis=1)

    # --- conv stack (both branches at once) --------------------------------
    h1 = conv_layer(x_ref[...], "c1w", "c1b")                      # (32, 16)
    h2 = conv_layer(stack_taps(h1), "c2w", "c2b")                  # (32, 32)
    h3 = conv_layer(stack_taps(h2), "c3w", "c3b")                  # (32, 64)

    # --- fc1: joint (position, channel) contraction on the MXU -------------
    # pre1[b, f] = sum_{p,c} h3[16*b + p, c] * fc1_w[f, c*L + (p-1)]
    r0 = _OFFS["fc1w"]
    acc = jnp.zeros((ROWS, F1), f32)
    for p in range(1, L + 1):
        w1p = p_ref[r0 + (p - 1) * C3: r0 + p * C3, 0:F1]          # (64, 128)
        contrib = jnp.dot(h3, w1p, preferred_element_type=f32)     # (32, 128)
        acc = acc + jnp.where(rloc == p, contrib, 0.0)
    pre1 = jnp.concatenate(
        [jnp.sum(acc[:PW, :], axis=0, keepdims=True),
         jnp.sum(acc[PW:, :], axis=0, keepdims=True)], axis=0)     # (2, 128)
    a1 = jnp.maximum(pre1 + getp("fc1b"), 0.0)
    # TODO(synk): nn.Dropout(0.5) treated as identity (eval-mode semantics).

    # --- fc2 ---------------------------------------------------------------
    o = jnp.maximum(jnp.dot(a1, getp("fc2w"), preferred_element_type=f32)
                    + getp("fc2b"), 0.0)                           # (2, 64)

    # --- attention + head --------------------------------------------------
    o1 = o[0:1, :]                                                 # (1, 64)
    o2 = o[1:2, :]
    cat = jnp.concatenate([o1, o2], axis=1)                        # (1, 128)
    energy = jnp.tanh(jnp.sum(cat * getp("attw"), axis=1, keepdims=True)
                      + getp("attb"))                              # (1, 1)
    # softmax over a length-1 axis is identically 1.0; kept for graph fidelity.
    e = jnp.exp(energy - jnp.max(energy, axis=1, keepdims=True))
    attn = e / jnp.sum(e, axis=1, keepdims=True)                   # (1, 1) == 1.0

    feat = jnp.abs(o1 - o2) * attn                                 # (1, 64)
    logit = jnp.sum(feat * getp("fc3w"), axis=1, keepdims=True) + getp("fc3b")
    out_ref[...] = 1.0 / (1.0 + jnp.exp(-logit))                   # sigmoid


# ---------------------------------------------------------------------------
# Host-side packing: one parameter slab + one small stacked-input operand.
# ---------------------------------------------------------------------------
def pack_params(params):
    slab = np.zeros((SLAB_ROWS, LANES), np.float32)

    def put(name, arr):
        r0 = _OFFS[name]
        nr, nc = _SHAPES[name]
        slab[r0:r0 + nr, :nc] = np.asarray(arr, np.float32).reshape(nr, nc)

    def conv_block(w):  # torch (C_out, C_in, 3) -> fused-tap (3*C_in, C_out)
        w = np.asarray(w, np.float32)
        co, ci, k = w.shape
        return np.transpose(w, (2, 1, 0)).reshape(k * ci, co)      # row = k*C_in + ci

    put("c1w", conv_block(params["conv1_w"]))
    put("c1b", np.asarray(params["conv1_b"]).reshape(1, -1))
    put("c2w", conv_block(params["conv2_w"]))
    put("c2b", np.asarray(params["conv2_b"]).reshape(1, -1))
    put("c3w", conv_block(params["conv3_w"]))
    put("c3b", np.asarray(params["conv3_b"]).reshape(1, -1))

    w1 = np.asarray(params["fc1_w"], np.float32).reshape(F1, C3, L)   # [f, c, l]
    w1 = np.transpose(w1, (2, 1, 0)).reshape(L * C3, F1)              # row = l*C3 + c
    put("fc1w", w1)
    put("fc1b", np.asarray(params["fc1_b"]).reshape(1, -1))
    put("fc2w", np.asarray(params["fc2_w"], np.float32).T)            # (128, 64)
    put("fc2b", np.asarray(params["fc2_b"]).reshape(1, -1))
    put("fc3w", np.asarray(params["fc3_w"]).reshape(1, F2))
    put("fc3b", np.asarray(params["fc3_b"]).reshape(1, 1))
    put("attw", np.asarray(params["attn_w"]).reshape(1, 2 * F2))
    put("attb", np.asarray(params["attn_b"]).reshape(1, 1))
    return jnp.asarray(slab)


def pack_inputs(x1, x2):
    # (32,) column: branch1 code at rows 1..11, branch2 at rows 17..27, zero halos.
    xcol = jnp.zeros((ROWS,), jnp.float32)
    xcol = xcol.at[1:1 + L].set(x1.astype(jnp.float32).reshape(L))
    xcol = xcol.at[PW + 1:PW + 1 + L].set(x2.astype(jnp.float32).reshape(L))
    z1 = jnp.zeros((1,), jnp.float32)
    xm1 = jnp.concatenate([z1, xcol[:-1]])      # value at p-1
    xp1 = jnp.concatenate([xcol[1:], z1])       # value at p+1
    return jnp.stack([xm1, xcol, xp1], axis=1)  # (32, 3) fused-tap operand


def siamese_forward(param_slab, x1, x2):
    xin = pack_inputs(x1, x2)
    out = pl.pallas_call(
        _siamese_kernel,
        out_shape=jax.ShapeDtypeStruct((1, 1), jnp.float32),
        in_specs=[pl.BlockSpec(memory_space=pltpu.MemorySpace.VMEM),
                  pl.BlockSpec(memory_space=pltpu.MemorySpace.VMEM)],
        out_specs=pl.BlockSpec(memory_space=pltpu.MemorySpace.VMEM),
    )(xin, param_slab)
    return out[0, 0]  # torch `.item()` equivalent (a JAX scalar)


# ---------------------------------------------------------------------------
# Deterministic parameter init (PyTorch-style U(-1/sqrt(fan_in), 1/sqrt(fan_in))).
# ---------------------------------------------------------------------------
def init_params(key):
    specs = {
        "conv1_w": ((16, 1, 3), 1 * 3),   "conv1_b": ((16,), 1 * 3),
        "conv2_w": ((32, 16, 3), 16 * 3), "conv2_b": ((32,), 16 * 3),
        "conv3_w": ((64, 32, 3), 32 * 3), "conv3_b": ((64,), 32 * 3),
        "fc1_w": ((128, 64 * L), 64 * L), "fc1_b": ((128,), 64 * L),
        "fc2_w": ((64, 128), 128),        "fc2_b": ((64,), 128),
        "fc3_w": ((1, 64), 64),           "fc3_b": ((1,), 64),
        "attn_w": ((1, 128), 128),        "attn_b": ((1,), 128),
    }
    keys = jax.random.split(key, len(specs))
    params = {}
    for k, (name, (shape, fan_in)) in zip(keys, specs.items()):
        bound = 1.0 / np.sqrt(fan_in)
        params[name] = jax.random.uniform(k, shape, jnp.float32, -bound, bound)
    return params


# ---------------------------------------------------------------------------
# Pure-JAX reference (uses lax.conv) for a correctness check.
# ---------------------------------------------------------------------------
def reference_forward(params, x1, x2):
    def fwd_one(x):
        h = x[None, None, :]  # (N=1, C=1, L)
        for wn, bn in (("conv1_w", "conv1_b"),
                       ("conv2_w", "conv2_b"),
                       ("conv3_w", "conv3_b")):
            h = jax.lax.conv_general_dilated(
                h, params[wn], window_strides=(1,), padding=((1, 1),),
                dimension_numbers=("NCH", "OIH", "NCH"))
            h = jax.nn.relu(h + params[bn][None, :, None])
        f = h.reshape(1, -1)
        a1 = jax.nn.relu(f @ params["fc1_w"].T + params["fc1_b"])
        a2 = jax.nn.relu(a1 @ params["fc2_w"].T + params["fc2_b"])
        return a2  # (1, 64)

    o1, o2 = fwd_one(x1), fwd_one(x2)
    cat = jnp.concatenate([o1, o2], axis=1)
    energy = jnp.tanh(cat @ params["attn_w"].T + params["attn_b"])
    aw = jax.nn.softmax(energy, axis=1)
    out = jnp.abs(o1 - o2) * aw
    return jax.nn.sigmoid(out @ params["fc3_w"].T + params["fc3_b"])  # (1, 1)


if __name__ == "__main__":
    params = init_params(jax.random.PRNGKey(0))
    slab = pack_params(params)

    input1 = "4104B30304G"
    input2 = "4104244241G"
    x1 = process_code(input1)
    x2 = process_code(input2)

    out = jax.block_until_ready(siamese_forward(slab, x1, x2))
    ref = jax.block_until_ready(reference_forward(params, x1, x2))

    np.testing.assert_allclose(np.asarray(out), np.asarray(ref)[0, 0],
                               rtol=1e-4, atol=1e-5)
    print("KERNEL_OK")
</pallas_src>

<mosaic_0001>
module attributes {stable_mosaic.version = 11 : i64} {
  func.func @_siamese_kernel(%arg0: memref<32x3xf32, #tpu.memory_space<vmem>>, %arg1: memref<1056x128xf32, #tpu.memory_space<vmem>>, %arg2: memref<1x1xf32, #tpu.memory_space<vmem>>) attributes {dimension_semantics = [], scalar_prefetch = 0 : i64, scratch_operands = 0 : i64, tpu.core_type = #tpu.core_type<tc>} {
    %0 = tpu.iota {dimensions = array<i32: 0>} : vector<32x1xi32>
    %c16_i32 = arith.constant 16 : i32
    %c0_i32 = arith.constant 0 : i32
    %1 = arith.cmpi eq, %c16_i32, %c0_i32 : i32
    %c1_i32 = arith.constant 1 : i32
    %2 = arith.select %1, %c1_i32, %c16_i32 : i32
    %3 = vector.broadcast %2 : i32 to vector<32x1xi32>
    %4 = arith.remsi %0, %3 : vector<32x1xi32>
    %c0_i32_0 = arith.constant 0 : i32
    %5 = vector.broadcast %c0_i32_0 : i32 to vector<32x1xi32>
    %6 = arith.cmpi ne, %4, %5 : vector<32x1xi32>
    %c0_i32_1 = arith.constant 0 : i32
    %7 = vector.broadcast %c0_i32_1 : i32 to vector<32x1xi32>
    %8 = arith.cmpi slt, %4, %7 : vector<32x1xi32>
    %c0_i32_2 = arith.constant 0 : i32
    %9 = arith.cmpi slt, %2, %c0_i32_2 : i32
    %10 = vector.broadcast %9 : i1 to vector<32x1xi1>
    %11 = vector.broadcast %10 : vector<32x1xi1> to vector<32x1xi1>
    %12 = arith.xori %8, %11 : vector<32x1xi1>
    %13 = arith.andi %12, %6 : vector<32x1xi1>
    %14 = vector.broadcast %2 : i32 to vector<32x1xi32>
    %15 = arith.addi %4, %14 : vector<32x1xi32>
    %16 = arith.select %13, %15, %4 : vector<32x1xi1>, vector<32x1xi32>
    %c1_i32_3 = arith.constant 1 : i32
    %17 = vector.broadcast %c1_i32_3 : i32 to vector<32x1xi32>
    %18 = arith.cmpi sge, %16, %17 : vector<32x1xi32>
    %c11_i32 = arith.constant 11 : i32
    %19 = vector.broadcast %c11_i32 : i32 to vector<32x1xi32>
    %20 = arith.cmpi sle, %16, %19 : vector<32x1xi32>
    %21 = arith.andi %18, %20 : vector<32x1xi1>
    %22 = arith.extui %21 : vector<32x1xi1> to vector<32x1xi32>
    %23 = arith.sitofp %22 : vector<32x1xi32> to vector<32x1xf32>
    %c0 = arith.constant 0 : index
    %c0_4 = arith.constant 0 : index
    %24 = vector.load %arg0[%c0, %c0_4] : memref<32x3xf32, #tpu.memory_space<vmem>>, vector<32x3xf32>
    %c0_5 = arith.constant 0 : index
    %c0_6 = arith.constant 0 : index
    %25 = vector.load %arg1[%c0_5, %c0_6] : memref<1056x128xf32, #tpu.memory_space<vmem>>, vector<3x16xf32>
    %c8 = arith.constant 8 : index
    %c0_7 = arith.constant 0 : index
    %26 = vector.load %arg1[%c8, %c0_7] : memref<1056x128xf32, #tpu.memory_space<vmem>>, vector<1x16xf32>
    %cst = arith.constant dense<0.000000e+00> : vector<32x16xf32>
    %27 = tpu.matmul %24, %25, %cst {dimension_numbers = #tpu.dot_dimension_numbers<[1], [0], [0], [1], [0, 0, 1, 1], [], []>} : vector<32x3xf32>, vector<3x16xf32>, vector<32x16xf32> -> vector<32x16xf32>
    %28 = vector.broadcast %26 : vector<1x16xf32> to vector<32x16xf32>
    %29 = arith.addf %27, %28 : vector<32x16xf32>
    %cst_8 = arith.constant 0.000000e+00 : f32
    %30 = vector.broadcast %cst_8 : f32 to vector<32x16xf32>
    %31 = arith.maximumf %29, %30 : vector<32x16xf32>
    %32 = vector.broadcast %23 : vector<32x1xf32> to vector<32x16xf32>
    %33 = arith.mulf %31, %32 : vector<32x16xf32>
    %cst_9 = arith.constant 0.000000e+00 : f32
    %34 = vector.broadcast %cst_9 : f32 to vector<1x16xf32>
    %35 = vector.extract_strided_slice %33 {offsets = [0, 0], sizes = [31, 16], strides = [1, 1]} : vector<32x16xf32> to vector<31x16xf32>
    %36 = tpu.concatenate %34, %35 in 0 : vector<1x16xf32>, vector<31x16xf32> -> vector<32x16xf32>
    %37 = vector.extract_strided_slice %33 {offsets = [1, 0], sizes = [31, 16], strides = [1, 1]} : vector<32x16xf32> to vector<31x16xf32>
    %38 = tpu.concatenate %37, %34 in 0 : vector<31x16xf32>, vector<1x16xf32> -> vector<32x16xf32>
    %39 = tpu.concatenate %36, %33, %38 in 1 : vector<32x16xf32>, vector<32x16xf32>, vector<32x16xf32> -> vector<32x48xf32>
    %c16 = arith.constant 16 : index
    %c0_10 = arith.constant 0 : index
    %40 = vector.load %arg1[%c16, %c0_10] : memref<1056x128xf32, #tpu.memory_space<vmem>>, vector<48x32xf32>
    %c64 = arith.constant 64 : index
    %c0_11 = arith.constant 0 : index
    %41 = vector.load %arg1[%c64, %c0_11] : memref<1056x128xf32, #tpu.memory_space<vmem>>, vector<1x32xf32>
    %cst_12 = arith.constant dense<0.000000e+00> : vector<32x32xf32>
    %42 = tpu.matmul %39, %40, %cst_12 {dimension_numbers = #tpu.dot_dimension_numbers<[1], [0], [0], [1], [0, 0, 1, 1], [], []>} : vector<32x48xf32>, vector<48x32xf32>, vector<32x32xf32> -> vector<32x32xf32>
    %43 = vector.broadcast %41 : vector<1x32xf32> to vector<32x32xf32>
    %44 = arith.addf %42, %43 : vector<32x32xf32>
    %cst_13 = arith.constant 0.000000e+00 : f32
    %45 = vector.broadcast %cst_13 : f32 to vector<32x32xf32>
    %46 = arith.maximumf %44, %45 : vector<32x32xf32>
    %47 = vector.broadcast %23 : vector<32x1xf32> to vector<32x32xf32>
    %48 = arith.mulf %46, %47 : vector<32x32xf32>
    %cst_14 = arith.constant 0.000000e+00 : f32
    %49 = vector.broadcast %cst_14 : f32 to vector<1x32xf32>
    %50 = vector.extract_strided_slice %48 {offsets = [0, 0], sizes = [31, 32], strides = [1, 1]} : vector<32x32xf32> to vector<31x32xf32>
    %51 = tpu.concatenate %49, %50 in 0 : vector<1x32xf32>, vector<31x32xf32> -> vector<32x32xf32>
    %52 = vector.extract_strided_slice %48 {offsets = [1, 0], sizes = [31, 32], strides = [1, 1]} : vector<32x32xf32> to vector<31x32xf32>
    %53 = tpu.concatenate %52, %49 in 0 : vector<31x32xf32>, vector<1x32xf32> -> vector<32x32xf32>
    %54 = tpu.concatenate %51, %48, %53 in 1 : vector<32x32xf32>, vector<32x32xf32>, vector<32x32xf32> -> vector<32x96xf32>
    %c72 = arith.constant 72 : index
    %c0_15 = arith.constant 0 : index
    %55 = vector.load %arg1[%c72, %c0_15] : memref<1056x128xf32, #tpu.memory_space<vmem>>, vector<96x64xf32>
    %c168 = arith.constant 168 : index
    %c0_16 = arith.constant 0 : index
    %56 = vector.load %arg1[%c168, %c0_16] : memref<1056x128xf32, #tpu.memory_space<vmem>>, vector<1x64xf32>
    %cst_17 = arith.constant dense<0.000000e+00> : vector<32x64xf32>
    %57 = tpu.matmul %54, %55, %cst_17 {dimension_numbers = #tpu.dot_dimension_numbers<[1], [0], [0], [1], [0, 0, 1, 1], [], []>} : vector<32x96xf32>, vector<96x64xf32>, vector<32x64xf32> -> vector<32x64xf32>
    %58 = vector.broadcast %56 : vector<1x64xf32> to vector<32x64xf32>
    %59 = arith.addf %57, %58 : vector<32x64xf32>
    %cst_18 = arith.constant 0.000000e+00 : f32
    %60 = vector.broadcast %cst_18 : f32 to vector<32x64xf32>
    %61 = arith.maximumf %59, %60 : vector<32x64xf32>
    %62 = vector.broadcast %23 : vector<32x1xf32> to vector<32x64xf32>
    %63 = arith.mulf %61, %62 : vector<32x64xf32>
    %cst_19 = arith.constant 0.000000e+00 : f32
    %64 = vector.broadcast %cst_19 : f32 to vector<32x128xf32>
    %c176 = arith.constant 176 : index
    %c0_20 = arith.constant 0 : index
    %65 = vector.load %arg1[%c176, %c0_20] : memref<1056x128xf32, #tpu.memory_space<vmem>>, vector<64x128xf32>
    %cst_21 = arith.constant dense<0.000000e+00> : vector<32x128xf32>
    %66 = tpu.matmul %63, %65, %cst_21 {dimension_numbers = #tpu.dot_dimension_numbers<[1], [0], [0], [1], [0, 0, 1, 1], [], []>} : vector<32x64xf32>, vector<64x128xf32>, vector<32x128xf32> -> vector<32x128xf32>
    %c1_i32_22 = arith.constant 1 : i32
    %67 = vector.broadcast %c1_i32_22 : i32 to vector<32x1xi32>
    %68 = arith.cmpi eq, %16, %67 : vector<32x1xi32>
    %cst_23 = arith.constant 0.000000e+00 : f32
    %69 = vector.shape_cast %68 : vector<32x1xi1> to vector<32x1xi1>
    %70 = vector.broadcast %69 : vector<32x1xi1> to vector<32x128xi1>
    %71 = vector.broadcast %cst_23 : f32 to vector<32x128xf32>
    %72 = arith.select %70, %66, %71 : vector<32x128xi1>, vector<32x128xf32>
    %73 = arith.addf %64, %72 : vector<32x128xf32>
    %c240 = arith.constant 240 : index
    %c0_24 = arith.constant 0 : index
    %74 = vector.load %arg1[%c240, %c0_24] : memref<1056x128xf32, #tpu.memory_space<vmem>>, vector<64x128xf32>
    %cst_25 = arith.constant dense<0.000000e+00> : vector<32x128xf32>
    %75 = tpu.matmul %63, %74, %cst_25 {dimension_numbers = #tpu.dot_dimension_numbers<[1], [0], [0], [1], [0, 0, 1, 1], [], []>} : vector<32x64xf32>, vector<64x128xf32>, vector<32x128xf32> -> vector<32x128xf32>
    %c2_i32 = arith.constant 2 : i32
    %76 = vector.broadcast %c2_i32 : i32 to vector<32x1xi32>
    %77 = arith.cmpi eq, %16, %76 : vector<32x1xi32>
    %cst_26 = arith.constant 0.000000e+00 : f32
    %78 = vector.shape_cast %77 : vector<32x1xi1> to vector<32x1xi1>
    %79 = vector.broadcast %78 : vector<32x1xi1> to vector<32x128xi1>
    %80 = vector.broadcast %cst_26 : f32 to vector<32x128xf32>
    %81 = arith.select %79, %75, %80 : vector<32x128xi1>, vector<32x128xf32>
    %82 = arith.addf %73, %81 : vector<32x128xf32>
    %c304 = arith.constant 304 : index
    %c0_27 = arith.constant 0 : index
    %83 = vector.load %arg1[%c304, %c0_27] : memref<1056x128xf32, #tpu.memory_space<vmem>>, vector<64x128xf32>
    %cst_28 = arith.constant dense<0.000000e+00> : vector<32x128xf32>
    %84 = tpu.matmul %63, %83, %cst_28 {dimension_numbers = #tpu.dot_dimension_numbers<[1], [0], [0], [1], [0, 0, 1, 1], [], []>} : vector<32x64xf32>, vector<64x128xf32>, vector<32x128xf32> -> vector<32x128xf32>
    %c3_i32 = arith.constant 3 : i32
    %85 = vector.broadcast %c3_i32 : i32 to vector<32x1xi32>
    %86 = arith.cmpi eq, %16, %85 : vector<32x1xi32>
    %cst_29 = arith.constant 0.000000e+00 : f32
    %87 = vector.shape_cast %86 : vector<32x1xi1> to vector<32x1xi1>
    %88 = vector.broadcast %87 : vector<32x1xi1> to vector<32x128xi1>
    %89 = vector.broadcast %cst_29 : f32 to vector<32x128xf32>
    %90 = arith.select %88, %84, %89 : vector<32x128xi1>, vector<32x128xf32>
    %91 = arith.addf %82, %90 : vector<32x128xf32>
    %c368 = arith.constant 368 : index
    %c0_30 = arith.constant 0 : index
    %92 = vector.load %arg1[%c368, %c0_30] : memref<1056x128xf32, #tpu.memory_space<vmem>>, vector<64x128xf32>
    %cst_31 = arith.constant dense<0.000000e+00> : vector<32x128xf32>
    %93 = tpu.matmul %63, %92, %cst_31 {dimension_numbers = #tpu.dot_dimension_numbers<[1], [0], [0], [1], [0, 0, 1, 1], [], []>} : vector<32x64xf32>, vector<64x128xf32>, vector<32x128xf32> -> vector<32x128xf32>
    %c4_i32 = arith.constant 4 : i32
    %94 = vector.broadcast %c4_i32 : i32 to vector<32x1xi32>
    %95 = arith.cmpi eq, %16, %94 : vector<32x1xi32>
    %cst_32 = arith.constant 0.000000e+00 : f32
    %96 = vector.shape_cast %95 : vector<32x1xi1> to vector<32x1xi1>
    %97 = vector.broadcast %96 : vector<32x1xi1> to vector<32x128xi1>
    %98 = vector.broadcast %cst_32 : f32 to vector<32x128xf32>
    %99 = arith.select %97, %93, %98 : vector<32x128xi1>, vector<32x128xf32>
    %100 = arith.addf %91, %99 : vector<32x128xf32>
    %c432 = arith.constant 432 : index
    %c0_33 = arith.constant 0 : index
    %101 = vector.load %arg1[%c432, %c0_33] : memref<1056x128xf32, #tpu.memory_space<vmem>>, vector<64x128xf32>
    %cst_34 = arith.constant dense<0.000000e+00> : vector<32x128xf32>
    %102 = tpu.matmul %63, %101, %cst_34 {dimension_numbers = #tpu.dot_dimension_numbers<[1], [0], [0], [1], [0, 0, 1, 1], [], []>} : vector<32x64xf32>, vector<64x128xf32>, vector<32x128xf32> -> vector<32x128xf32>
    %c5_i32 = arith.constant 5 : i32
    %103 = vector.broadcast %c5_i32 : i32 to vector<32x1xi32>
    %104 = arith.cmpi eq, %16, %103 : vector<32x1xi32>
    %cst_35 = arith.constant 0.000000e+00 : f32
    %105 = vector.shape_cast %104 : vector<32x1xi1> to vector<32x1xi1>
    %106 = vector.broadcast %105 : vector<32x1xi1> to vector<32x128xi1>
    %107 = vector.broadcast %cst_35 : f32 to vector<32x128xf32>
    %108 = arith.select %106, %102, %107 : vector<32x128xi1>, vector<32x128xf32>
    %109 = arith.addf %100, %108 : vector<32x128xf32>
    %c496 = arith.constant 496 : index
    %c0_36 = arith.constant 0 : index
    %110 = vector.load %arg1[%c496, %c0_36] : memref<1056x128xf32, #tpu.memory_space<vmem>>, vector<64x128xf32>
    %cst_37 = arith.constant dense<0.000000e+00> : vector<32x128xf32>
    %111 = tpu.matmul %63, %110, %cst_37 {dimension_numbers = #tpu.dot_dimension_numbers<[1], [0], [0], [1], [0, 0, 1, 1], [], []>} : vector<32x64xf32>, vector<64x128xf32>, vector<32x128xf32> -> vector<32x128xf32>
    %c6_i32 = arith.constant 6 : i32
    %112 = vector.broadcast %c6_i32 : i32 to vector<32x1xi32>
    %113 = arith.cmpi eq, %16, %112 : vector<32x1xi32>
    %cst_38 = arith.constant 0.000000e+00 : f32
    %114 = vector.shape_cast %113 : vector<32x1xi1> to vector<32x1xi1>
    %115 = vector.broadcast %114 : vector<32x1xi1> to vector<32x128xi1>
    %116 = vector.broadcast %cst_38 : f32 to vector<32x128xf32>
    %117 = arith.select %115, %111, %116 : vector<32x128xi1>, vector<32x128xf32>
    %118 = arith.addf %109, %117 : vector<32x128xf32>
    %c560 = arith.constant 560 : index
    %c0_39 = arith.constant 0 : index
    %119 = vector.load %arg1[%c560, %c0_39] : memref<1056x128xf32, #tpu.memory_space<vmem>>, vector<64x128xf32>
    %cst_40 = arith.constant dense<0.000000e+00> : vector<32x128xf32>
    %120 = tpu.matmul %63, %119, %cst_40 {dimension_numbers = #tpu.dot_dimension_numbers<[1], [0], [0], [1], [0, 0, 1, 1], [], []>} : vector<32x64xf32>, vector<64x128xf32>, vector<32x128xf32> -> vector<32x128xf32>
    %c7_i32 = arith.constant 7 : i32
    %121 = vector.broadcast %c7_i32 : i32 to vector<32x1xi32>
    %122 = arith.cmpi eq, %16, %121 : vector<32x1xi32>
    %cst_41 = arith.constant 0.000000e+00 : f32
    %123 = vector.shape_cast %122 : vector<32x1xi1> to vector<32x1xi1>
    %124 = vector.broadcast %123 : vector<32x1xi1> to vector<32x128xi1>
    %125 = vector.broadcast %cst_41 : f32 to vector<32x128xf32>
    %126 = arith.select %124, %120, %125 : vector<32x128xi1>, vector<32x128xf32>
    %127 = arith.addf %118, %126 : vector<32x128xf32>
    %c624 = arith.constant 624 : index
    %c0_42 = arith.constant 0 : index
    %128 = vector.load %arg1[%c624, %c0_42] : memref<1056x128xf32, #tpu.memory_space<vmem>>, vector<64x128xf32>
    %cst_43 = arith.constant dense<0.000000e+00> : vector<32x128xf32>
    %129 = tpu.matmul %63, %128, %cst_43 {dimension_numbers = #tpu.dot_dimension_numbers<[1], [0], [0], [1], [0, 0, 1, 1], [], []>} : vector<32x64xf32>, vector<64x128xf32>, vector<32x128xf32> -> vector<32x128xf32>
    %c8_i32 = arith.constant 8 : i32
    %130 = vector.broadcast %c8_i32 : i32 to vector<32x1xi32>
    %131 = arith.cmpi eq, %16, %130 : vector<32x1xi32>
    %cst_44 = arith.constant 0.000000e+00 : f32
    %132 = vector.shape_cast %131 : vector<32x1xi1> to vector<32x1xi1>
    %133 = vector.broadcast %132 : vector<32x1xi1> to vector<32x128xi1>
    %134 = vector.broadcast %cst_44 : f32 to vector<32x128xf32>
    %135 = arith.select %133, %129, %134 : vector<32x128xi1>, vector<32x128xf32>
    %136 = arith.addf %127, %135 : vector<32x128xf32>
    %c688 = arith.constant 688 : index
    %c0_45 = arith.constant 0 : index
    %137 = vector.load %arg1[%c688, %c0_45] : memref<1056x128xf32, #tpu.memory_space<vmem>>, vector<64x128xf32>
    %cst_46 = arith.constant dense<0.000000e+00> : vector<32x128xf32>
    %138 = tpu.matmul %63, %137, %cst_46 {dimension_numbers = #tpu.dot_dimension_numbers<[1], [0], [0], [1], [0, 0, 1, 1], [], []>} : vector<32x64xf32>, vector<64x128xf32>, vector<32x128xf32> -> vector<32x128xf32>
    %c9_i32 = arith.constant 9 : i32
    %139 = vector.broadcast %c9_i32 : i32 to vector<32x1xi32>
    %140 = arith.cmpi eq, %16, %139 : vector<32x1xi32>
    %cst_47 = arith.constant 0.000000e+00 : f32
    %141 = vector.shape_cast %140 : vector<32x1xi1> to vector<32x1xi1>
    %142 = vector.broadcast %141 : vector<32x1xi1> to vector<32x128xi1>
    %143 = vector.broadcast %cst_47 : f32 to vector<32x128xf32>
    %144 = arith.select %142, %138, %143 : vector<32x128xi1>, vector<32x128xf32>
    %145 = arith.addf %136, %144 : vector<32x128xf32>
    %c752 = arith.constant 752 : index
    %c0_48 = arith.constant 0 : index
    %146 = vector.load %arg1[%c752, %c0_48] : memref<1056x128xf32, #tpu.memory_space<vmem>>, vector<64x128xf32>
    %cst_49 = arith.constant dense<0.000000e+00> : vector<32x128xf32>
    %147 = tpu.matmul %63, %146, %cst_49 {dimension_numbers = #tpu.dot_dimension_numbers<[1], [0], [0], [1], [0, 0, 1, 1], [], []>} : vector<32x64xf32>, vector<64x128xf32>, vector<32x128xf32> -> vector<32x128xf32>
    %c10_i32 = arith.constant 10 : i32
    %148 = vector.broadcast %c10_i32 : i32 to vector<32x1xi32>
    %149 = arith.cmpi eq, %16, %148 : vector<32x1xi32>
    %cst_50 = arith.constant 0.000000e+00 : f32
    %150 = vector.shape_cast %149 : vector<32x1xi1> to vector<32x1xi1>
    %151 = vector.broadcast %150 : vector<32x1xi1> to vector<32x128xi1>
    %152 = vector.broadcast %cst_50 : f32 to vector<32x128xf32>
    %153 = arith.select %151, %147, %152 : vector<32x128xi1>, vector<32x128xf32>
    %154 = arith.addf %145, %153 : vector<32x128xf32>
    %c816 = arith.constant 816 : index
    %c0_51 = arith.constant 0 : index
    %155 = vector.load %arg1[%c816, %c0_51] : memref<1056x128xf32, #tpu.memory_space<vmem>>, vector<64x128xf32>
    %cst_52 = arith.constant dense<0.000000e+00> : vector<32x128xf32>
    %156 = tpu.matmul %63, %155, %cst_52 {dimension_numbers = #tpu.dot_dimension_numbers<[1], [0], [0], [1], [0, 0, 1, 1], [], []>} : vector<32x64xf32>, vector<64x128xf32>, vector<32x128xf32> -> vector<32x128xf32>
    %c11_i32_53 = arith.constant 11 : i32
    %157 = vector.broadcast %c11_i32_53 : i32 to vector<32x1xi32>
    %158 = arith.cmpi eq, %16, %157 : vector<32x1xi32>
    %cst_54 = arith.constant 0.000000e+00 : f32
    %159 = vector.shape_cast %158 : vector<32x1xi1> to vector<32x1xi1>
    %160 = vector.broadcast %159 : vector<32x1xi1> to vector<32x128xi1>
    %161 = vector.broadcast %cst_54 : f32 to vector<32x128xf32>
    %162 = arith.select %160, %156, %161 : vector<32x128xi1>, vector<32x128xf32>
    %163 = arith.addf %154, %162 : vector<32x128xf32>
    %164 = vector.extract_strided_slice %163 {offsets = [0, 0], sizes = [16, 128], strides = [1, 1]} : vector<32x128xf32> to vector<16x128xf32>
    %cst_55 = arith.constant dense<0.000000e+00> : vector<128xf32>
    %165 = vector.multi_reduction <add>, %164, %cst_55 [0] : vector<16x128xf32> to vector<128xf32>
    %166 = vector.shape_cast %165 : vector<128xf32> to vector<1x128xf32>
    %167 = vector.extract_strided_slice %163 {offsets = [16, 0], sizes = [16, 128], strides = [1, 1]} : vector<32x128xf32> to vector<16x128xf32>
    %cst_56 = arith.constant dense<0.000000e+00> : vector<128xf32>
    %168 = vector.multi_reduction <add>, %167, %cst_56 [0] : vector<16x128xf32> to vector<128xf32>
    %169 = vector.shape_cast %168 : vector<128xf32> to vector<1x128xf32>
    %170 = tpu.concatenate %166, %169 in 0 : vector<1x128xf32>, vector<1x128xf32> -> vector<2x128xf32>
    %c880 = arith.constant 880 : index
    %c0_57 = arith.constant 0 : index
    %171 = vector.load %arg1[%c880, %c0_57] : memref<1056x128xf32, #tpu.memory_space<vmem>>, vector<1x128xf32>
    %172 = vector.broadcast %171 : vector<1x128xf32> to vector<2x128xf32>
    %173 = arith.addf %170, %172 : vector<2x128xf32>
    %cst_58 = arith.constant 0.000000e+00 : f32
    %174 = vector.broadcast %cst_58 : f32 to vector<2x128xf32>
    %175 = arith.maximumf %173, %174 : vector<2x128xf32>
    %c888 = arith.constant 888 : index
    %c0_59 = arith.constant 0 : index
    %176 = vector.load %arg1[%c888, %c0_59] : memref<1056x128xf32, #tpu.memory_space<vmem>>, vector<128x64xf32>
    %cst_60 = arith.constant dense<0.000000e+00> : vector<2x64xf32>
    %177 = tpu.matmul %175, %176, %cst_60 {dimension_numbers = #tpu.dot_dimension_numbers<[1], [0], [0], [1], [0, 0, 1, 1], [], []>} : vector<2x128xf32>, vector<128x64xf32>, vector<2x64xf32> -> vector<2x64xf32>
    %c1016 = arith.constant 1016 : index
    %c0_61 = arith.constant 0 : index
    %178 = vector.load %arg1[%c1016, %c0_61] : memref<1056x128xf32, #tpu.memory_space<vmem>>, vector<1x64xf32>
    %179 = vector.broadcast %178 : vector<1x64xf32> to vector<2x64xf32>
    %180 = arith.addf %177, %179 : vector<2x64xf32>
    %cst_62 = arith.constant 0.000000e+00 : f32
    %181 = vector.broadcast %cst_62 : f32 to vector<2x64xf32>
    %182 = arith.maximumf %180, %181 : vector<2x64xf32>
    %183 = vector.extract_strided_slice %182 {offsets = [0, 0], sizes = [1, 64], strides = [1, 1]} : vector<2x64xf32> to vector<1x64xf32>
    %184 = vector.extract_strided_slice %182 {offsets = [1, 0], sizes = [1, 64], strides = [1, 1]} : vector<2x64xf32> to vector<1x64xf32>
    %185 = tpu.concatenate %183, %184 in 1 : vector<1x64xf32>, vector<1x64xf32> -> vector<1x128xf32>
    %c1040 = arith.constant 1040 : index
    %c0_63 = arith.constant 0 : index
    %186 = vector.load %arg1[%c1040, %c0_63] : memref<1056x128xf32, #tpu.memory_space<vmem>>, vector<1x128xf32>
    %187 = arith.mulf %185, %186 : vector<1x128xf32>
    %cst_64 = arith.constant dense<0.000000e+00> : vector<1xf32>
    %188 = vector.multi_reduction <add>, %187, %cst_64 [1] : vector<1x128xf32> to vector<1xf32>
    %189 = vector.shape_cast %188 : vector<1xf32> to vector<1x1xf32>
    %c1048 = arith.constant 1048 : index
    %c0_65 = arith.constant 0 : index
    %190 = vector.load %arg1[%c1048, %c0_65] : memref<1056x128xf32, #tpu.memory_space<vmem>>, vector<1x1xf32>
    %191 = arith.addf %189, %190 : vector<1x1xf32>
    %192 = math.tanh %191 : vector<1x1xf32>
    %cst_66 = arith.constant dense<0xFF800000> : vector<1xf32>
    %193 = vector.multi_reduction <maximumf>, %192, %cst_66 [1] : vector<1x1xf32> to vector<1xf32>
    %194 = vector.shape_cast %193 : vector<1xf32> to vector<1x1xf32>
    %195 = arith.subf %192, %194 : vector<1x1xf32>
    %196 = math.exp %195 : vector<1x1xf32>
    %cst_67 = arith.constant dense<0.000000e+00> : vector<1xf32>
    %197 = vector.multi_reduction <add>, %196, %cst_67 [1] : vector<1x1xf32> to vector<1xf32>
    %198 = vector.shape_cast %197 : vector<1xf32> to vector<1x1xf32>
    %199 = arith.divf %196, %198 : vector<1x1xf32>
    %200 = arith.subf %183, %184 : vector<1x64xf32>
    %201 = math.absf %200 : vector<1x64xf32>
    %202 = vector.broadcast %199 : vector<1x1xf32> to vector<1x64xf32>
    %203 = arith.mulf %201, %202 : vector<1x64xf32>
    %c1024 = arith.constant 1024 : index
    %c0_68 = arith.constant 0 : index
    %204 = vector.load %arg1[%c1024, %c0_68] : memref<1056x128xf32, #tpu.memory_space<vmem>>, vector<1x64xf32>
    %205 = arith.mulf %203, %204 : vector<1x64xf32>
    %cst_69 = arith.constant dense<0.000000e+00> : vector<1xf32>
    %206 = vector.multi_reduction <add>, %205, %cst_69 [1] : vector<1x64xf32> to vector<1xf32>
    %207 = vector.shape_cast %206 : vector<1xf32> to vector<1x1xf32>
    %c1032 = arith.constant 1032 : index
    %c0_70 = arith.constant 0 : index
    %208 = vector.load %arg1[%c1032, %c0_70] : memref<1056x128xf32, #tpu.memory_space<vmem>>, vector<1x1xf32>
    %209 = arith.addf %207, %208 : vector<1x1xf32>
    %cst_71 = arith.constant 0.000000e+00 : f32
    %210 = vector.broadcast %cst_71 : f32 to vector<1x1xf32>
    %211 = arith.subf %210, %209 : vector<1x1xf32>
    %212 = math.exp %211 : vector<1x1xf32>
    %cst_72 = arith.constant 1.000000e+00 : f32
    %213 = vector.broadcast %cst_72 : f32 to vector<1x1xf32>
    %214 = arith.addf %213, %212 : vector<1x1xf32>
    %cst_73 = arith.constant 1.000000e+00 : f32
    %215 = vector.broadcast %cst_73 : f32 to vector<1x1xf32>
    %216 = arith.divf %215, %214 : vector<1x1xf32>
    %c0_74 = arith.constant 0 : index
    %c0_75 = arith.constant 0 : index
    %217 = vector.load %arg2[%c0_74, %c0_75] : memref<1x1xf32, #tpu.memory_space<vmem>>, vector<1x1xf32>
    tpu.vector_store %arg2[%c0_74, %c0_75], %216 {strides = array<i32>} : memref<1x1xf32, #tpu.memory_space<vmem>>, vector<1x1xf32>,
    return
  }
}

</mosaic_0001>

<bundles_post_ra>
// kernel: tpu_custom_call.1
= control target key start
LH: loop header
LB: loop body
LE: loop exit
PB: predicated region body
PF: predicated region fallthrough
CT: control target
= control target key end

     0   :  { %7 = vsyncpa [#allocation3], 0  ;;  %s3167_s0 = inlined_call_operand.vmem [shape: f32[32,3], index: 0, kind: input, shape index: {}]   ;;  %s3168_s1 = inlined_call_operand.hbm [shape: f32[1056,128], index: 1, kind: input, shape index: {}]   ;;  %s3169_s2 = inlined_call_operand.hbm [shape: f32[1,1], index: 2, kind: output, shape index: {}]  }
   0x1   :  { %8 = vsyncpa [#allocation4], 0  ;;  %s2894_s9 = smov [#allocation2]   ;;  %s2846_s13 = scalar_lea.hbm %s3168_s1, 16896 }
   0x2   :  { %s16_s10 = sshll.u32 %s2894_s9, 4  ;;  %p2847_p0 = scmp.ne.s32.totalorder %s3168_s1, %s2846_s13  ;;  %s17_s10 = int_to_ptr.vmem [resolvable:$true] %s16_s10 }
   0x3   :  { %p2850_p1 = scmp.lt.u32.totalorder %s2846_s13, %s3168_s1 }
   0x5   :  { %p2852_p2 = pnand %p2850_p1, %p2847_p0 }
   0x7   :  { %2855 = shalt.err (!%p2852_p2)
}
   0x8   :  { %s2856_s18 = scalar_lea.vmem %s17_s10, 16896  ;;  %p2861_p4 = scmp.lt.s32.totalorder %s17_s10, %s17_s10 }
   0x9   :  { %p2857_p3 = scmp.ne.s32.totalorder %s17_s10, %s2856_s18  ;;  %p2862_p5 = scmp.lt.s32.totalorder %s2856_s18, %s2856_s18 }
   0xb   :  { %p2863_p6 = por %p2862_p5, %p2861_p4 }
   0xd   :  { %p2864_p7 = pnand %p2863_p6, %p2857_p3 }
   0xf   :  { %2867 = shalt.err (!%p2864_p7)
}
  0x10   :  { %s2895_s19 = smov 128   ;;  %s2896_s20 = smov 8  }
  0x11   :  { %22 = dma.hbm_to_vmem [thread:$0]  %s3168_s1, 16896, %s17_s10, [#allocation3], %s2895_s19, %s2895_s19, %s2896_s20  }
  0x12   :  { %2890 = dma.done.wait [#allocation3], 16896  }
  0x13   :  { %2891 = vsyncadd [#allocation3], 4294950400  ;;  %vm122_vm0 = vcmask 1042432   ;;  %vm109_vm1 = vcmask 23552   ;;  %v103_v0 = vld [vmem:[#allocation2] sm:$0x7]  ;;  %v26_v5 = vlaneseq }
  0x14   :  { %v99_v1 = vld [vmem:[%s3167_s0] sm:$0xff]  ;;  %v100_v2 = vld [vmem:[%s3167_s0 + $0x8] sm:$0xff]  ;;  %2255 = vmatprep.subr.msk.mxu0 %vm122_vm0, %v103_v0  ;;  %v101_v3 = vld [vmem:[%s3167_s0 + $0x10] sm:$0xff]  ;;  %v2897_v27 = vmov 0.0   ;;  %vm236_vm6 = vcmask 1046528   ;;  %vm223_vm7 = vcmask 1040384  }
  0x15   :  { %2257 = vmatprep.mubr.msk.f32.mxu0 %vm109_vm1, %v99_v1  ;;  %2256 = vmatpush3.msk.msra.mxu0 %vm122_vm0, %v103_v0  ;;  %v102_v4 = vld [vmem:[%s3167_s0 + $0x18] sm:$0xff]  ;;  %v27_v6 = vshrl.u32 %v26_v5, 7  ;;  %v281_v8 = vld [vmem:[#allocation2 + $0x10] sm:$0xff]  ;;  %v283_v15 = vld [vmem:[#allocation2 + $0x20] sm:$0xff]  ;;  %s2898_s0 = smov 16   ;;  %s2899_s30 = smov 32  }
  0x16   :  { %2258 = vmatmul.mubr.msk.f32.vlgmr.msra.gmra.mrb[0].mxu0 %vm109_vm1, %v100_v2  ;;  %v282_v9 = vld [vmem:[#allocation2 + $0x18] sm:$0xff]  ;;  %v284_v16 = vld [vmem:[#allocation2 + $0x28] sm:$0xff]  ;;  %v285_v22 = vld [vmem:[#allocation2 + $0x30] sm:$0xff]  ;;  %vm276_vm8 = vcmask 261120   ;;  %vm271_vm9 = vcmask 130048   ;;  %vm292_vm10 = vcmask 392192  }
  0x17   :  { %2260 = vmatprep.mubr.msk.f32.mxu0 %vm109_vm1, %v101_v3  ;;  %v28_v7 = vadd.s32 8, %v27_v6  ;;  %v2588_v10 = vpack.c.bf16 %v282_v9, %v281_v8  ;;  %v29_v11 = vadd.s32 16, %v27_v6  ;;  %v30_v13 = vadd.s32 24, %v27_v6  ;;  %v2013_v19 = vld [vmem:[#allocation2 + $0x8] ss:$0 sm:$0xff]  ;;  %v286_v23 = vld [vmem:[#allocation2 + $0x38] sm:$0xff] }
  0x18   :  { %v2946_v14 = vand.u32 15, %v27_v6  ;;  %v2592_v17 = vpack.c.bf16 %v284_v16, %v283_v15  ;;  %v2596_v26 = vpack.c.bf16 %v286_v23, %v285_v22  ;;  %v457_v15 = vld [vmem:[#allocation2 + $0x48] sm:$0xff]  ;;  %v458_v16 = vld [vmem:[#allocation2 + $0x50] sm:$0xff]  ;;  %s2900_s3 = smov 64   ;;  %vm452_vm11 = vcmask 523264   ;;  %s2904_s4 = smov [#allocation5]  }
  0x19   :  { %v2944_v12 = vand.u32 15, %v28_v7  ;;  %2589 = vmatprep.subr.bf16.mxu1 %v2588_v10  ;;  %v2948_v18 = vand.u32 15, %v29_v11  ;;  %v2951_v20 = vand.u32 15, %v30_v13  ;;  %v461_v23 = vld [vmem:[#allocation2 + $0x68] sm:$0xff]  ;;  %vm474_vm12 = vcmask 785408   ;;  %s2000_s5 = sshll.u32 %s2904_s4, 4  ;;  %s2001_s5 = int_to_ptr.vmem [resolvable:$true] %s2000_s5 }
  0x1a   :  { %2261 = vmatmul.mubr.msk.f32.gmra.mrb[2].mxu0 %vm109_vm1, %v102_v4  ;;  %2591 = vmatpush3.bf16.msra.mxu1 %v2588_v10  ;;  %vm79_vm3 = vcmp.ge.s32.totalorder %v2946_v14, 1  ;;  %vm2902_vm13 = vmmov 0   ;;  %vm685_vm14 = vcmp.eq.s32.totalorder %v2946_v14, 1  ;;  %vm798_vm15 = vcmp.eq.s32.totalorder %v2946_v14, 2  ;;  %s2868_s6 = scalar_lea.vmem %s2001_s5, 16  ;;  %s2872_s7 = scalar_lea.vmem %s2001_s5, 32 }
  0x1b   :  { %vm84_vm2 = vcmp.le.s32.totalorder %v2944_v12, 11  ;;  %2593 = vmatprep.subr.bf16.mxu1 %v2592_v17  ;;  %vm81_vm4 = vcmp.ge.s32.totalorder %v2948_v18, 1  ;;  %v2959_v31 = vsel %vm79_vm3, 1.0, %v2897_v27  ;;  %vm86_vm5 = vcmp.le.s32.totalorder %v2951_v20, 11  ;;  %p2869_p8 = scmp.ne.s32.totalorder %s2001_s5, %s2868_s6  ;;  %p2873_p9 = scmp.lt.s32.totalorder %s2001_s5, %s2001_s5 }
  0x1c   :  { %v2955_v28 = vsel %vm84_vm2, 1.0, %v2897_v27  ;;  %v2964_v36 = vsel %vm81_vm4, 1.0, %v2897_v27  ;;  %v2968_v39 = vsel %vm86_vm5, 1.0, %v2897_v27  ;;  %vm687_vm0 = vcmp.eq.s32.totalorder %v2948_v18, 1  ;;  %p2874_p10 = scmp.lt.s32.totalorder %s2872_s7, %s2868_s6 }
  0x1d   :  { %vm800_vm1 = vcmp.eq.s32.totalorder %v2948_v18, 2  ;;  %vm911_vm2 = vcmp.eq.s32.totalorder %v2946_v14, 3  ;;  %vm1024_vm3 = vcmp.eq.s32.totalorder %v2946_v14, 4  ;;  %vm913_vm4 = vcmp.eq.s32.totalorder %v2948_v18, 3 }
  0x1e   :  { %2595 = vmatpush3.bf16.msra.mxu1 %v2592_v17  ;;  %v459_v17 = vld [vmem:[#allocation2 + $0x58] sm:$0xff]  ;;  %vm1026_vm5 = vcmp.eq.s32.totalorder %v2948_v18, 4  ;;  %p2875_p11 = por %p2874_p10, %p2873_p9 }
  0x1f   :  { %2597 = vmatprep.subr.bf16.mxu1 %v2596_v26 }
  0x20   :  { %p2876_p12 = pnand %p2875_p11, %p2869_p8 }
  0x22   :  { %2599 = vmatpush3.bf16.msra.mxu1 %v2596_v26  ;;  %v463_v26 = vld [vmem:[#allocation2 + $0x78] sm:$0xff] }
  0xe9   :  { %v2259_v21 = vpop.f32.mrb[0].mxu0 }
  0xea   :  { %v198_v24 = vadd.f32 %v2259_v21, %v2013_v19  ;;  %v192_v25 = vpop.f32.mrb[1].mxu0  ;;  %v460_v21 = vld [vmem:[#allocation2 + $0x60] sm:$0xff] }
  0xeb   :  { %v193_v29 = vadd.f32 %v2013_v19, %v192_v25  ;;  %v2604_v22 = vpack.c.bf16 %v460_v21, %v459_v17 }
  0xec   :  { %v212_v30 = vmax.f32 %v198_v24, 0.0  ;;  %v462_v24 = vld [vmem:[#allocation2 + $0x70] sm:$0xff] }
  0xed   :  { %v211_v32 = vmax.f32 %v193_v29, 0.0  ;;  %v2262_v33 = vpop.f32.mrb[2].mxu0  ;;  %v2608_v25 = vpack.c.bf16 %v462_v24, %v461_v23  ;;  %v464_v29 = vld [vmem:[#allocation2 + $0x80] sm:$0xff] }
  0xee   :  { %v216_v34 = vmul.f32 %v2955_v28, %v212_v30  ;;  %v208_v35 = vadd.f32 %v2262_v33, %v2013_v19  ;;  %v202_v37 = vpop.f32.mrb[3].mxu0  ;;  %v2612_v30 = vpack.c.bf16 %v464_v29, %v463_v26  ;;  %v466_v33 = vld [vmem:[#allocation2 + $0x90] sm:$0xff]  ;;  %v933_v26 = vld [vmem:[#allocation2 + $0x180] sm:$0xff]  ;;  %v934_v29 = vld [vmem:[#allocation2 + $0x188] sm:$0xff] }
  0xef   :  { %v215_v38 = vmul.f32 %v2959_v31, %v211_v32  ;;  %v203_v40 = vadd.f32 %v2013_v19, %v202_v37  ;;  %v2600_v19 = vpack.c.bf16 %v458_v16, %v457_v15  ;;  %v465_v32 = vld [vmem:[#allocation2 + $0x88] sm:$0xff]  ;;  %v468_v37 = vld [vmem:[#allocation2 + $0xa0] sm:$0xff] }
  0xf0   :  { %v225_v41 = vrot.slane %v216_v34, 7  ;;  %v214_v42 = vmax.f32 %v208_v35, 0.0  ;;  %248 = vrot.lane.b32.xlu0 %v216_v34, %s2898_s0  ;;  %v238_v43 = vrot.slane %v216_v34, 1  ;;  %v2616_v34 = vpack.c.bf16 %v466_v33, %v465_v32  ;;  %v467_v35 = vld [vmem:[#allocation2 + $0x98] sm:$0xff] }
  0xf1   :  { %v224_v44 = vrot.slane %v215_v38, 7  ;;  %v213_v45 = vmax.f32 %v203_v40, 0.0  ;;  %v237_v46 = vrot.slane %v215_v38, 1  ;;  %2601 = vmatprep.subr.bf16.mxu0 %v2600_v19  ;;  %v2019_v40 = vld [vmem:[#allocation2 + $0x40] ss:$0 sm:$0xff] }
  0xf2   :  { %v218_v47 = vmul.f32 %v2968_v39, %v214_v42  ;;  %2603 = vmatpush3.bf16.msra.mxu0 %v2600_v19 }
  0xf3   :  { %v217_v48 = vmul.f32 %v2964_v36, %v213_v45  ;;  %v239_v49 = vsel %vm236_vm6, %v237_v46, %v238_v43  ;;  %v226_v50 = vsel %vm223_vm7, %v224_v44, %v225_v41  ;;  %v235_v62 = vsel %vm223_vm7, 0.0, %v224_v44  ;;  %2605 = vmatprep.subr.bf16.mxu0 %v2604_v22 }
  0xf4   :  { %v229_v51 = vrot.slane %v218_v47, 7  ;;  %246 = vrot.lane.b32.xlu0 %v215_v38, %s2898_s0  ;;  %259 = vrot.lane.b32.xlu1 %v239_v49, %s2899_s30  ;;  %v242_v52 = vrot.slane %v218_v47, 1  ;;  %v2620_v38 = vpack.c.bf16 %v468_v37, %v467_v35 }
  0xf5   :  { %v227_v53 = vrot.slane %v217_v48, 7  ;;  %v240_v54 = vrot.slane %v217_v48, 1 }
  0xf6   :  { %v245_v59 = vsel %vm236_vm6, %v242_v52, 0.0  ;;  %2607 = vmatpush3.bf16.msra.mxu0 %v2604_v22 }
  0xf7   :  { %v243_v55 = vsel %vm236_vm6, %v240_v54, %v242_v52  ;;  %v241_v56 = vsel %vm236_vm6, %v238_v43, %v240_v54  ;;  %v228_v57 = vsel %vm223_vm7, %v225_v41, %v227_v53  ;;  %v230_v58 = vsel %vm223_vm7, %v227_v53, %v229_v51  ;;  %2609 = vmatprep.subr.bf16.mxu0 %v2608_v25 }
  0xf8   :  { %250 = vrot.lane.b32.xlu0 %v217_v48, %s2898_s0  ;;  %252 = vrot.lane.b32.xlu1 %v218_v47, %s2898_s0 }
  0xfa   :  { %2611 = vmatpush3.bf16.msra.mxu0 %v2608_v25 }
  0xfb   :  { %2613 = vmatprep.subr.bf16.mxu0 %v2612_v30 }
  0xfc   :  { %263 = vrot.lane.b32.xlu0 %v243_v55, %s2899_s30  ;;  %261 = vrot.lane.b32.xlu1 %v241_v56, %s2899_s30 }
  0xfe   :  { %2615 = vmatpush3.bf16.msra.mxu0 %v2612_v30 }
  0xff   :  { %2617 = vmatprep.subr.bf16.mxu0 %v2616_v34 }
 0x100   :  { %265 = vrot.lane.b32.xlu1 %v245_v59, %s2899_s30 }
 0x102   :  { %2619 = vmatpush3.bf16.msra.mxu0 %v2616_v34  ;;  %v2676_v34 = vpack.c.bf16 %v934_v29, %v933_v26 }
 0x103   :  { %2621 = vmatprep.subr.bf16.mxu0 %v2620_v38 }
 0x106   :  { %2623 = vmatpush3.bf16.msra.mxu0 %v2620_v38 }
 0x162   :  { %v249_v60 = vpop.permute.xlu0 %248 }
 0x163   :  { %v273_v4 = vsel %vm271_vm9, %v226_v50, %v249_v60 }
 0x166   :  { %v247_v61 = vpop.permute.xlu0 %246  ;;  %v260_v63 = vpop.permute.xlu1 %259 }
 0x167   :  { %v272_v0 = vsel %vm271_vm9, %v235_v62, %v247_v61 }
 0x168   :  { %v277_v1 = vsel %vm276_vm8, %v272_v0, %v260_v63 }
 0x169   :  { %2275 = vmatprep.mubr.msk.f32.mxu1 %vm292_vm10, %v277_v1  ;;  %v580_v1 = vld [vmem:[#allocation2 + $0xb0] sm:$0xff] }
 0x16a   :  { %v251_v2 = vpop.permute.xlu0 %250  ;;  %v253_v3 = vpop.permute.xlu1 %252 }
 0x16b   :  { %v274_v5 = vsel %vm271_vm9, %v228_v57, %v251_v2  ;;  %v275_v10 = vsel %vm271_vm9, %v230_v58, %v253_v3  ;;  %v581_v2 = vld [vmem:[#allocation2 + $0xb8] sm:$0xff]  ;;  %v931_v3 = vld [vmem:[#allocation2 + $0x170] sm:$0xff]  ;;  %vm1139_vm9 = vcmp.eq.s32.totalorder %v2948_v18, 5 }
 0x16e   :  { %v264_v6 = vpop.permute.xlu0 %263  ;;  %v262_v7 = vpop.permute.xlu1 %261 }
 0x16f   :  { %v279_v8 = vsel %vm276_vm8, %v274_v5, %v264_v6  ;;  %v278_v9 = vsel %vm276_vm8, %v273_v4, %v262_v7  ;;  %v2624_v6 = vpack.c.bf16 %v581_v2, %v580_v1  ;;  %v932_v7 = vld [vmem:[#allocation2 + $0x178] sm:$0xff] }
 0x170   :  { %2276 = vmatmul.mubr.msk.f32.vlgmr.msra.gmra.mrb[0].mxu1 %vm292_vm10, %v278_v9  ;;  %v583_v9 = vld [vmem:[#allocation2 + $0xc8] sm:$0xff] }
 0x171   :  { %2278 = vmatprep.mubr.msk.f32.mxu1 %vm292_vm10, %v279_v8  ;;  %v582_v8 = vld [vmem:[#allocation2 + $0xc0] sm:$0xff]  ;;  %2625 = vmatprep.subr.bf16.mxu1 %v2624_v6 }
 0x172   :  { %v266_v11 = vpop.permute.xlu1 %265  ;;  %2627 = vmatpush3.bf16.msra.mxu1 %v2624_v6  ;;  %v707_v6 = vld [vmem:[#allocation2 + $0x100] sm:$0xff] }
 0x173   :  { %v280_v13 = vsel %vm276_vm8, %v275_v10, %v266_v11  ;;  %v2672_v10 = vpack.c.bf16 %v932_v7, %v931_v3  ;;  %v2628_v11 = vpack.c.bf16 %v583_v9, %v582_v8  ;;  %v708_v8 = vld [vmem:[#allocation2 + $0x108] sm:$0xff]  ;;  %v1159_v9 = vld [vmem:[#allocation2 + $0x200] sm:$0xff] }
 0x174   :  { %2279 = vmatmul.mubr.msk.f32.gmra.mrb[2].mxu1 %vm292_vm10, %v280_v13  ;;  %vm1252_vm10 = vcmp.eq.s32.totalorder %v2948_v18, 6 }
 0x175   :  { %2673 = vmatprep.subr.bf16.mxu0 %v2672_v10  ;;  %2629 = vmatprep.subr.bf16.mxu1 %v2628_v11 }
 0x176   :  { %2631 = vmatpush3.bf16.msra.mxu1 %v2628_v11 }
 0x243   :  { %v2277_v41 = vpop.f32.mrb[0].mxu1 }
 0x244   :  { %v377_v42 = vadd.f32 %v2277_v41, %v2019_v40  ;;  %v371_v43 = vpop.f32.mrb[1].mxu1 }
 0x245   :  { %v372_v44 = vadd.f32 %v2019_v40, %v371_v43 }
 0x246   :  { %v391_v45 = vmax.f32 %v377_v42, 0.0 }
 0x247   :  { %v390_v46 = vmax.f32 %v372_v44, 0.0  ;;  %v2280_v47 = vpop.f32.mrb[2].mxu1 }
 0x248   :  { %v395_v48 = vmul.f32 %v2955_v28, %v391_v45  ;;  %v387_v49 = vadd.f32 %v2280_v47, %v2019_v40  ;;  %v381_v50 = vpop.f32.mrb[3].mxu1  ;;  %v585_v47 = vld [vmem:[#allocation2 + $0xd8] sm:$0xff] }
 0x249   :  { %v394_v51 = vmul.f32 %v2959_v31, %v390_v46  ;;  %v382_v52 = vadd.f32 %v2019_v40, %v381_v50  ;;  %v584_v46 = vld [vmem:[#allocation2 + $0xd0] sm:$0xff]  ;;  %v936_v50 = vld [vmem:[#allocation2 + $0x198] sm:$0xff] }
 0x24a   :  { %v403_v53 = vrot.slane %v395_v48, 7  ;;  %v393_v54 = vmax.f32 %v387_v49, 0.0  ;;  %425 = vrot.lane.b32.xlu1 %v395_v48, %s2899_s30  ;;  %v415_v55 = vrot.slane %v395_v48, 1  ;;  %v935_v48 = vld [vmem:[#allocation2 + $0x190] sm:$0xff]  ;;  %v2632_v49 = vpack.c.bf16 %v585_v47, %v584_v46  ;;  %v820_v46 = vld [vmem:[#allocation2 + $0x140] sm:$0xff]  ;;  %v821_v47 = vld [vmem:[#allocation2 + $0x148] sm:$0xff] }
 0x24b   :  { %v402_v56 = vrot.slane %v394_v51, 7  ;;  %v392_v57 = vmax.f32 %v382_v52, 0.0  ;;  %423 = vrot.lane.b32.xlu0 %v394_v51, %s2899_s30  ;;  %v414_v58 = vrot.slane %v394_v51, 1  ;;  %v2680_v51 = vpack.c.bf16 %v936_v50, %v935_v48  ;;  %v586_v52 = vld [vmem:[#allocation2 + $0xe0] sm:$0xff] }
 0x24c   :  { %v397_v59 = vmul.f32 %v2968_v39, %v393_v54  ;;  %2633 = vmatprep.subr.bf16.mxu1 %v2632_v49  ;;  %v937_v54 = vld [vmem:[#allocation2 + $0x1a0] sm:$0xff]  ;;  %v2660_v50 = vpack.c.bf16 %v821_v47, %v820_v46  ;;  %v1497_v46 = vld [vmem:[#allocation2 + $0x2b8] sm:$0xff] }
 0x24d   :  { %v396_v60 = vmul.f32 %v2964_v36, %v392_v57  ;;  %v416_v61 = vsel %vm236_vm6, %v414_v58, %v415_v55  ;;  %v404_v62 = vsel %vm223_vm7, %v402_v56, %v403_v53  ;;  %v413_v23 = vsel %vm223_vm7, 0.0, %v402_v56  ;;  %2635 = vmatpush3.bf16.msra.mxu1 %v2632_v49  ;;  %v938_v56 = vld [vmem:[#allocation2 + $0x1a8] sm:$0xff]  ;;  %v705_v58 = vld [vmem:[#allocation2 + $0xf0] sm:$0xff]  ;;  %v1385_v48 = vld [vmem:[#allocation2 + $0x280] sm:$0xff] }
 0x24e   :  { %v407_v63 = vrot.slane %v397_v59, 7  ;;  %v419_v0 = vrot.slane %v397_v59, 1  ;;  %v2684_v57 = vpack.c.bf16 %v938_v56, %v937_v54  ;;  %v1386_v49 = vld [vmem:[#allocation2 + $0x288] sm:$0xff]  ;;  %v1387_v54 = vld [vmem:[#allocation2 + $0x290] sm:$0xff] }
 0x24f   :  { %v405_v4 = vrot.slane %v396_v60, 7  ;;  %436 = vrot.lane.b32.xlu0 %v416_v61, %s2900_s3  ;;  %v417_v5 = vrot.slane %v396_v60, 1 }
 0x250   :  { %v422_v19 = vsel %vm236_vm6, %v419_v0, 0.0 }
 0x251   :  { %v418_v13 = vsel %vm236_vm6, %v415_v55, %v417_v5  ;;  %v420_v15 = vsel %vm236_vm6, %v417_v5, %v419_v0  ;;  %v406_v16 = vsel %vm223_vm7, %v403_v53, %v405_v4  ;;  %v408_v17 = vsel %vm223_vm7, %v405_v4, %v407_v63  ;;  %v587_v53 = vld [vmem:[#allocation2 + $0xe8] sm:$0xff] }
 0x252   :  { %438 = vrot.lane.b32.xlu1 %v418_v13, %s2900_s3  ;;  %v2636_v55 = vpack.c.bf16 %v587_v53, %v586_v52  ;;  %v2024_v0 = vld [vmem:[#allocation2 + $0xa8] ss:$0 sm:$0xff]  ;;  %v822_v52 = vld [vmem:[#allocation2 + $0x150] sm:$0xff]  ;;  %v823_v53 = vld [vmem:[#allocation2 + $0x158] sm:$0xff]  ;;  %vm1137_vm6 = vcmp.eq.s32.totalorder %v2946_v14, 5 }
 0x253   :  { %427 = vrot.lane.b32.xlu0 %v396_v60, %s2899_s30  ;;  %v1157_v60 = vld [vmem:[#allocation2 + $0x1f0] sm:$0xff]  ;;  %v2664_v56 = vpack.c.bf16 %v823_v53, %v822_v52  ;;  %v1501_v52 = vld [vmem:[#allocation2 + $0x2d8] sm:$0xff] }
 0x254   :  { %2637 = vmatprep.subr.bf16.mxu1 %v2636_v55 }
 0x255   :  { %2639 = vmatpush3.bf16.msra.mxu1 %v2636_v55  ;;  %v1388_v55 = vld [vmem:[#allocation2 + $0x298] sm:$0xff] }
 0x256   :  { %429 = vrot.lane.b32.xlu1 %v397_v59, %s2899_s30  ;;  %v706_v59 = vld [vmem:[#allocation2 + $0xf8] sm:$0xff] }
 0x257   :  { %440 = vrot.lane.b32.xlu0 %v420_v15, %s2900_s3  ;;  %v2640_v61 = vpack.c.bf16 %v706_v59, %v705_v58  ;;  %v2644_v15 = vpack.c.bf16 %v708_v8, %v707_v6  ;;  %v824_v58 = vld [vmem:[#allocation2 + $0x160] sm:$0xff]  ;;  %v825_v59 = vld [vmem:[#allocation2 + $0x168] sm:$0xff] }
 0x258   :  { %v1046_v6 = vld [vmem:[#allocation2 + $0x1c0] sm:$0xff] }
 0x259   :  { %2641 = vmatprep.subr.bf16.mxu1 %v2640_v61  ;;  %v1611_v8 = vld [vmem:[#allocation2 + $0x300] sm:$0xff] }
 0x25a   :  { %442 = vrot.lane.b32.xlu1 %v422_v19, %s2900_s3 }
 0x2bc   :  { %v426_v22 = vpop.permute.xlu1 %425 }
 0x2bd   :  { %v424_v21 = vpop.permute.xlu0 %423  ;;  %v449_v32 = vsel %vm276_vm8, %v404_v62, %v426_v22  ;;  %v1158_v62 = vld [vmem:[#allocation2 + $0x1f8] sm:$0xff]  ;;  %v1161_v22 = vld [vmem:[#allocation2 + $0x210] sm:$0xff] }
 0x2be   :  { %v448_v24 = vsel %vm276_vm8, %v413_v23, %v424_v21  ;;  %v2704_v63 = vpack.c.bf16 %v1158_v62, %v1157_v60  ;;  %v710_v21 = vld [vmem:[#allocation2 + $0x118] sm:$0xff]  ;;  %v1389_v60 = vld [vmem:[#allocation2 + $0x2a0] sm:$0xff]  ;;  %v2668_v62 = vpack.c.bf16 %v825_v59, %v824_v58 }
 0x2bf   :  { %v1162_v23 = vld [vmem:[#allocation2 + $0x218] sm:$0xff] }
 0x2c0   :  { %v2712_v29 = vpack.c.bf16 %v1162_v23, %v1161_v22  ;;  %v1723_v58 = vld [vmem:[#allocation2 + $0x338] sm:$0xff] }
 0x2c1   :  { %v437_v25 = vpop.permute.xlu0 %436 }
 0x2c2   :  { %v453_v30 = vsel %vm452_vm11, %v448_v24, %v437_v25 }
 0x2c3   :  { %2305 = vmatprep.mubr.msk.f32.mxu0 %vm474_vm12, %v453_v30 }
 0x2c4   :  { %v439_v33 = vpop.permute.xlu1 %438 }
 0x2c5   :  { %v454_v35 = vsel %vm452_vm11, %v449_v32, %v439_v33  ;;  %v428_v37 = vpop.permute.xlu0 %427  ;;  %v711_v32 = vld [vmem:[#allocation2 + $0x120] sm:$0xff]  ;;  %v712_v33 = vld [vmem:[#allocation2 + $0x128] sm:$0xff] }
 0x2c6   :  { %2306 = vmatmul.mubr.msk.f32.vlgmr.msra.gmra.mrb[4].mxu0 %vm474_vm12, %v454_v35  ;;  %v450_v40 = vsel %vm276_vm8, %v406_v16, %v428_v37  ;;  %v1164_v35 = vld [vmem:[#allocation2 + $0x228] sm:$0xff] }
 0x2c7   :  { %2675 = vmatpush3.bf16.msra.mxu0 %v2672_v10  ;;  %v1160_v10 = vld [vmem:[#allocation2 + $0x208] sm:$0xff] }
 0x2c8   :  { %v430_v38 = vpop.permute.xlu1 %429  ;;  %2677 = vmatprep.subr.bf16.mxu0 %v2676_v34  ;;  %v2708_v16 = vpack.c.bf16 %v1160_v10, %v1159_v9  ;;  %v1612_v9 = vld [vmem:[#allocation2 + $0x308] sm:$0xff] }
 0x2c9   :  { %v441_v41 = vpop.permute.xlu0 %440  ;;  %v451_v43 = vsel %vm276_vm8, %v408_v17, %v430_v38  ;;  %v709_v17 = vld [vmem:[#allocation2 + $0x110] sm:$0xff]  ;;  %vm1250_vm8 = vcmp.eq.s32.totalorder %v2946_v14, 6 }
 0x2ca   :  { %v455_v42 = vsel %vm452_vm11, %v450_v40, %v441_v41  ;;  %v2648_v26 = vpack.c.bf16 %v710_v21, %v709_v17  ;;  %v818_v40 = vld [vmem:[#allocation2 + $0x130] sm:$0xff]  ;;  %v2652_v41 = vpack.c.bf16 %v712_v33, %v711_v32  ;;  %v1049_v17 = vld [vmem:[#allocation2 + $0x1d8] sm:$0xff] }
 0x2cb   :  { %2308 = vmatprep.mubr.msk.f32.mxu0 %vm474_vm12, %v455_v42  ;;  %2679 = vmatpush3.bf16.msra.mxu0 %v2676_v34  ;;  %v1163_v34 = vld [vmem:[#allocation2 + $0x220] sm:$0xff]  ;;  %v1614_v21 = vld [vmem:[#allocation2 + $0x318] sm:$0xff] }
 0x2cc   :  { %v443_v44 = vpop.permute.xlu1 %442  ;;  %2681 = vmatprep.subr.bf16.mxu0 %v2680_v51  ;;  %v2716_v42 = vpack.c.bf16 %v1164_v35, %v1163_v34  ;;  %v1271_v32 = vld [vmem:[#allocation2 + $0x238] sm:$0xff]  ;;  %v1272_v34 = vld [vmem:[#allocation2 + $0x240] sm:$0xff]  ;;  %v1273_v35 = vld [vmem:[#allocation2 + $0x248] sm:$0xff] }
 0x2cd   :  { %v456_v45 = vsel %vm452_vm11, %v451_v43, %v443_v44  ;;  %v819_v43 = vld [vmem:[#allocation2 + $0x138] sm:$0xff]  ;;  %v1383_v44 = vld [vmem:[#allocation2 + $0x270] sm:$0xff] }
 0x2ce   :  { %2309 = vmatmul.mubr.msk.f32.gmra.mrb[6].mxu0 %vm474_vm12, %v456_v45  ;;  %vm1363_vm12 = vcmp.eq.s32.totalorder %v2946_v14, 7 }
 0x2cf   :  { %2683 = vmatpush3.bf16.msra.mxu0 %v2680_v51  ;;  %v2740_v51 = vpack.c.bf16 %v1386_v49, %v1385_v48  ;;  %v1498_v48 = vld [vmem:[#allocation2 + $0x2c0] sm:$0xff]  ;;  %v1499_v49 = vld [vmem:[#allocation2 + $0x2c8] sm:$0xff] }
 0x2d0   :  { %2685 = vmatprep.subr.bf16.mxu0 %v2684_v57 }
 0x2d3   :  { %2687 = vmatpush3.bf16.msra.mxu0 %v2684_v57  ;;  %v2744_v57 = vpack.c.bf16 %v1388_v55, %v1387_v54  ;;  %v1502_v54 = vld [vmem:[#allocation2 + $0x2e0] sm:$0xff]  ;;  %v1503_v55 = vld [vmem:[#allocation2 + $0x2e8] sm:$0xff] }
 0x2d4   :  { %2705 = vmatprep.subr.bf16.mxu0 %v2704_v63 }
 0x399   :  { %v2307_v1 = vpop.f32.mrb[4].mxu0 }
 0x39a   :  { %v559_v2 = vadd.f32 %v2307_v1, %v2024_v0  ;;  %v553_v3 = vpop.f32.mrb[5].mxu0  ;;  %v1045_v1 = vld [vmem:[#allocation2 + $0x1b8] sm:$0xff] }
 0x39b   :  { %v554_v4 = vadd.f32 %v2024_v0, %v553_v3  ;;  %v1610_v3 = vld [vmem:[#allocation2 + $0x2f8] sm:$0xff] }
 0x39c   :  { %v573_v5 = vmax.f32 %v559_v2, 0.0  ;;  %v1609_v2 = vld [vmem:[#allocation2 + $0x2f0] sm:$0xff] }
 0x39d   :  { %v572_v7 = vmax.f32 %v554_v4, 0.0 }
 0x39e   :  { %v3032_v13 = vmul.f32 %v2955_v28, %v573_v5  ;;  %v2768_v5 = vpack.c.bf16 %v1610_v3, %v1609_v2  ;;  %v1728_v2 = vld [vmem:[#allocation2 + $0x360] sm:$0xff]  ;;  %v1729_v3 = vld [vmem:[#allocation2 + $0x368] sm:$0xff] }
 0x39f   :  { %v3029_v11 = vmul.f32 %v2959_v31, %v572_v7  ;;  %v1047_v7 = vld [vmem:[#allocation2 + $0x1c8] sm:$0xff] }
 0x3a0   :  { %v2692_v10 = vpack.c.bf16 %v1047_v7, %v1046_v6  ;;  %v1858_v6 = vld [vmem:[#allocation2 + $0x380] sm:$0xff]  ;;  %v2901_v7 = vmov 0.0|0.0  }
 0x3a1   :  { %v2310_v19 = vpop.f32.mrb[6].mxu0  ;;  %2327 = vmatprep.mubr.msk.f32.mxu1 %vm452_vm11, %v3029_v11  ;;  %2393 = vmatprep.mubr.msk.f32.mxu0 %vm452_vm11, %v3029_v11 }
 0x3a2   :  { %v569_v24 = vadd.f32 %v2310_v19, %v2024_v0  ;;  %v563_v25 = vpop.f32.mrb[7].mxu0  ;;  %2328 = vmatmul.mubr.msk.f32.vlgmr.msra.gmra.mrb[4].mxu1 %vm452_vm11, %v3032_v13  ;;  %2394 = vmatmul.mubr.msk.f32.vlgmr.msra.gmra.mrb[8].mxu0 %vm452_vm11, %v3032_v13  ;;  %v1613_v19 = vld [vmem:[#allocation2 + $0x310] sm:$0xff] }
 0x3a3   :  { %v564_v28 = vadd.f32 %v2024_v0, %v563_v25  ;;  %2643 = vmatpush3.bf16.msra.mxu1 %v2640_v61  ;;  %2707 = vmatpush3.bf16.msra.mxu0 %v2704_v63  ;;  %v1390_v61 = vld [vmem:[#allocation2 + $0x2a8] sm:$0xff]  ;;  %v1044_v0 = vld [vmem:[#allocation2 + $0x1b0] sm:$0xff]  ;;  %v2776_v23 = vpack.c.bf16 %v1614_v21, %v1613_v19  ;;  %v1865_v19 = vld [vmem:[#allocation2 + $0x3b8] sm:$0xff] }
 0x3a4   :  { %v575_v31 = vmax.f32 %v569_v24, 0.0  ;;  %2645 = vmatprep.subr.bf16.mxu1 %v2644_v15  ;;  %2709 = vmatprep.subr.bf16.mxu0 %v2708_v16  ;;  %v2748_v63 = vpack.c.bf16 %v1390_v61, %v1389_v60  ;;  %v2688_v4 = vpack.c.bf16 %v1045_v1, %v1044_v0  ;;  %v1050_v24 = vld [vmem:[#allocation2 + $0x1e0] sm:$0xff]  ;;  %v1051_v25 = vld [vmem:[#allocation2 + $0x1e8] sm:$0xff]  ;;  %v1727_v0 = vld [vmem:[#allocation2 + $0x358] sm:$0xff] }
 0x3a5   :  { %v574_v30 = vmax.f32 %v564_v28, 0.0  ;;  %v1615_v28 = vld [vmem:[#allocation2 + $0x320] sm:$0xff]  ;;  %v1725_v61 = vld [vmem:[#allocation2 + $0x348] sm:$0xff] }
 0x3a6   :  { %v3046_v38 = vmul.f32 %v2968_v39, %v575_v31  ;;  %v2656_v39 = vpack.c.bf16 %v819_v43, %v818_v40  ;;  %v1616_v31 = vld [vmem:[#allocation2 + $0x328] sm:$0xff]  ;;  %v2724_v40 = vpack.c.bf16 %v1273_v35, %v1272_v34  ;;  %v1724_v60 = vld [vmem:[#allocation2 + $0x340] sm:$0xff] }
 0x3a7   :  { %v3043_v37 = vmul.f32 %v2964_v36, %v574_v30  ;;  %2647 = vmatpush3.bf16.msra.mxu1 %v2644_v15  ;;  %2711 = vmatpush3.bf16.msra.mxu0 %v2708_v16  ;;  %v1384_v36 = vld [vmem:[#allocation2 + $0x278] sm:$0xff]  ;;  %v2772_v15 = vpack.c.bf16 %v1612_v9, %v1611_v8  ;;  %v1048_v16 = vld [vmem:[#allocation2 + $0x1d0] sm:$0xff]  ;;  %v1866_v21 = vld [vmem:[#allocation2 + $0x3c0] sm:$0xff] }
 0x3a8   :  { %2649 = vmatprep.subr.bf16.mxu1 %v2648_v26  ;;  %2713 = vmatprep.subr.bf16.mxu0 %v2712_v29  ;;  %v2736_v45 = vpack.c.bf16 %v1384_v36, %v1383_v44  ;;  %v2696_v22 = vpack.c.bf16 %v1049_v17, %v1048_v16  ;;  %v1270_v30 = vld [vmem:[#allocation2 + $0x230] sm:$0xff]  ;;  %v1276_v44 = vld [vmem:[#allocation2 + $0x260] sm:$0xff]  ;;  %v1277_v36 = vld [vmem:[#allocation2 + $0x268] sm:$0xff] }
 0x3a9   :  { %2330 = vmatprep.mubr.msk.f32.mxu1 %vm452_vm11, %v3043_v37  ;;  %2396 = vmatprep.mubr.msk.f32.mxu0 %vm452_vm11, %v3043_v37  ;;  %v2720_v33 = vpack.c.bf16 %v1271_v32, %v1270_v30  ;;  %v1860_v9 = vld [vmem:[#allocation2 + $0x390] sm:$0xff] }
 0x3aa   :  { %2331 = vmatmul.mubr.msk.f32.gmra.mrb[6].mxu1 %vm452_vm11, %v3046_v38  ;;  %2397 = vmatmul.mubr.msk.f32.gmra.mrb[10].mxu0 %vm452_vm11, %v3046_v38  ;;  %v1864_v17 = vld [vmem:[#allocation2 + $0x3b0] sm:$0xff] }
 0x3ab   :  { %2651 = vmatpush3.bf16.msra.mxu1 %v2648_v26  ;;  %2715 = vmatpush3.bf16.msra.mxu0 %v2712_v29  ;;  %v2700_v26 = vpack.c.bf16 %v1051_v25, %v1050_v24  ;;  %v2780_v29 = vpack.c.bf16 %v1616_v31, %v1615_v28  ;;  %v1868_v24 = vld [vmem:[#allocation2 + $0x3d0] sm:$0xff]  ;;  %v1869_v28 = vld [vmem:[#allocation2 + $0x3d8] sm:$0xff]  ;;  %v1870_v31 = vld [vmem:[#allocation2 + $0x3e0] sm:$0xff] }
 0x3ac   :  { %2349 = vmatprep.mubr.msk.f32.mxu1 %vm452_vm11, %v3029_v11  ;;  %2437 = vmatprep.mubr.msk.f32.mxu0 %vm452_vm11, %v3029_v11  ;;  %v1872_v30 = vld [vmem:[#allocation2 + $0x3f0] sm:$0xff] }
 0x3ad   :  { %2653 = vmatprep.subr.bf16.mxu1 %v2652_v41  ;;  %2717 = vmatprep.subr.bf16.mxu0 %v2716_v42 }
 0x3af   :  { %2655 = vmatpush3.bf16.msra.mxu1 %v2652_v41  ;;  %2719 = vmatpush3.bf16.msra.mxu0 %v2716_v42  ;;  %v1274_v41 = vld [vmem:[#allocation2 + $0x250] sm:$0xff]  ;;  %v1275_v42 = vld [vmem:[#allocation2 + $0x258] sm:$0xff] }
 0x3b0   :  { %2657 = vmatprep.subr.bf16.mxu1 %v2656_v39  ;;  %2737 = vmatprep.subr.bf16.mxu0 %v2736_v45  ;;  %v2728_v43 = vpack.c.bf16 %v1275_v42, %v1274_v41 }
 0x3b2   :  { %2350 = vmatmul.mubr.msk.f32.vlgmr.msra.gmra.mrb[8].mxu1 %vm452_vm11, %v3032_v13  ;;  %2438 = vmatmul.mubr.msk.f32.vlgmr.msra.gmra.mrb[12].mxu0 %vm452_vm11, %v3032_v13 }
 0x3b3   :  { %2352 = vmatprep.mubr.msk.f32.mxu1 %vm452_vm11, %v3043_v37  ;;  %2659 = vmatpush3.bf16.msra.mxu1 %v2656_v39  ;;  %v2732_v39 = vpack.c.bf16 %v1277_v36, %v1276_v44 }
 0x3b4   :  { %2440 = vmatprep.mubr.msk.f32.mxu0 %vm452_vm11, %v3043_v37  ;;  %2739 = vmatpush3.bf16.msra.mxu0 %v2736_v45  ;;  %v1496_v45 = vld [vmem:[#allocation2 + $0x2b0] sm:$0xff] }
 0x3b5   :  { %2661 = vmatprep.subr.bf16.mxu1 %v2660_v50  ;;  %2741 = vmatprep.subr.bf16.mxu0 %v2740_v51  ;;  %v2752_v47 = vpack.c.bf16 %v1497_v46, %v1496_v45 }
 0x3b6   :  { %2353 = vmatmul.mubr.msk.f32.gmra.mrb[10].mxu1 %vm452_vm11, %v3046_v38  ;;  %2441 = vmatmul.mubr.msk.f32.gmra.mrb[14].mxu0 %vm452_vm11, %v3046_v38 }
 0x3b7   :  { %2663 = vmatpush3.bf16.msra.mxu1 %v2660_v50  ;;  %2371 = vmatprep.mubr.msk.f32.mxu1 %vm452_vm11, %v3029_v11  ;;  %v2756_v50 = vpack.c.bf16 %v1499_v49, %v1498_v48 }
 0x3b8   :  { %2743 = vmatpush3.bf16.msra.mxu0 %v2740_v51  ;;  %2481 = vmatprep.mubr.msk.f32.mxu0 %vm452_vm11, %v3029_v11  ;;  %v1500_v51 = vld [vmem:[#allocation2 + $0x2d0] sm:$0xff] }
 0x3b9   :  { %2665 = vmatprep.subr.bf16.mxu1 %v2664_v56  ;;  %2745 = vmatprep.subr.bf16.mxu0 %v2744_v57  ;;  %v2760_v53 = vpack.c.bf16 %v1501_v52, %v1500_v51 }
 0x3bb   :  { %2667 = vmatpush3.bf16.msra.mxu1 %v2664_v56  ;;  %v2764_v56 = vpack.c.bf16 %v1503_v55, %v1502_v54 }
 0x3bc   :  { %2747 = vmatpush3.bf16.msra.mxu0 %v2744_v57  ;;  %2669 = vmatprep.subr.bf16.mxu1 %v2668_v62  ;;  %v1722_v57 = vld [vmem:[#allocation2 + $0x330] sm:$0xff] }
 0x3bd   :  { %2749 = vmatprep.subr.bf16.mxu0 %v2748_v63  ;;  %v2784_v59 = vpack.c.bf16 %v1723_v58, %v1722_v57 }
 0x3bf   :  { %2671 = vmatpush3.bf16.msra.mxu1 %v2668_v62  ;;  %v2788_v62 = vpack.c.bf16 %v1725_v61, %v1724_v60 }
 0x3c0   :  { %2751 = vmatpush3.bf16.msra.mxu0 %v2748_v63  ;;  %2689 = vmatprep.subr.bf16.mxu1 %v2688_v4  ;;  %v1726_v63 = vld [vmem:[#allocation2 + $0x350] sm:$0xff] }
 0x3c1   :  { %2769 = vmatprep.subr.bf16.mxu0 %v2768_v5  ;;  %v2792_v1 = vpack.c.bf16 %v1727_v0, %v1726_v63 }
 0x3c2   :  { %2372 = vmatmul.mubr.msk.f32.vlgmr.msra.gmra.mrb[12].mxu1 %vm452_vm11, %v3032_v13 }
 0x3c3   :  { %2482 = vmatmul.mubr.msk.f32.vlgmr.msra.gmra.mrb[16].mxu0 %vm452_vm11, %v3032_v13  ;;  %2374 = vmatprep.mubr.msk.f32.mxu1 %vm452_vm11, %v3043_v37 }
 0x3c4   :  { %2691 = vmatpush3.bf16.msra.mxu1 %v2688_v4  ;;  %2484 = vmatprep.mubr.msk.f32.mxu0 %vm452_vm11, %v3043_v37  ;;  %v2796_v4 = vpack.c.bf16 %v1729_v3, %v1728_v2 }
 0x3c5   :  { %2771 = vmatpush3.bf16.msra.mxu0 %v2768_v5  ;;  %2693 = vmatprep.subr.bf16.mxu1 %v2692_v10  ;;  %v1857_v5 = vld [vmem:[#allocation2 + $0x378] sm:$0xff] }
 0x3c6   :  { %2375 = vmatmul.mubr.msk.f32.gmra.mrb[14].mxu1 %vm452_vm11, %v3046_v38  ;;  %2773 = vmatprep.subr.bf16.mxu0 %v2772_v15  ;;  %v2801_v8 = vpack.c.bf16 %v1858_v6, %v1857_v5 }
 0x3c7   :  { %2485 = vmatmul.mubr.msk.f32.gmra.mrb[18].mxu0 %vm452_vm11, %v3046_v38  ;;  %2415 = vmatprep.mubr.msk.f32.mxu1 %vm452_vm11, %v3029_v11 }
 0x3c8   :  { %2695 = vmatpush3.bf16.msra.mxu1 %v2692_v10  ;;  %2525 = vmatprep.mubr.msk.f32.mxu0 %vm452_vm11, %v3029_v11 }
 0x3c9   :  { %2775 = vmatpush3.bf16.msra.mxu0 %v2772_v15  ;;  %2697 = vmatprep.subr.bf16.mxu1 %v2696_v22  ;;  %v1861_v15 = vld [vmem:[#allocation2 + $0x398] sm:$0xff] }
 0x3ca   :  { %2777 = vmatprep.subr.bf16.mxu0 %v2776_v23 }
 0x3cc   :  { %2699 = vmatpush3.bf16.msra.mxu1 %v2696_v22  ;;  %v2813_v22 = vpack.c.bf16 %v1866_v21, %v1865_v19 }
 0x3cd   :  { %2779 = vmatpush3.bf16.msra.mxu0 %v2776_v23  ;;  %2701 = vmatprep.subr.bf16.mxu1 %v2700_v26  ;;  %v1867_v23 = vld [vmem:[#allocation2 + $0x3c8] sm:$0xff] }
 0x3ce   :  { %2781 = vmatprep.subr.bf16.mxu0 %v2780_v29  ;;  %v2816_v25 = vpack.c.bf16 %v1868_v24, %v1867_v23 }
 0x3d0   :  { %2703 = vmatpush3.bf16.msra.mxu1 %v2700_v26  ;;  %v2819_v26 = vpack.c.bf16 %v1870_v31, %v1869_v28 }
 0x3d1   :  { %2783 = vmatpush3.bf16.msra.mxu0 %v2780_v29  ;;  %2721 = vmatprep.subr.bf16.mxu1 %v2720_v33  ;;  %v1871_v29 = vld [vmem:[#allocation2 + $0x3e8] sm:$0xff] }
 0x3d2   :  { %2800 = vmatprep.subr.bf16.mxu0 %v2901_v7  ;;  %v2822_v32 = vpack.c.bf16 %v1872_v30, %v1871_v29 }
 0x3d3   :  { %2416 = vmatmul.mubr.msk.f32.vlgmr.msra.gmra.mrb[16].mxu1 %vm452_vm11, %v3032_v13 }
 0x3d4   :  { %2526 = vmatmul.mubr.msk.f32.vlgmr.msra.gmra.mrb[20].mxu0 %vm452_vm11, %v3032_v13  ;;  %2418 = vmatprep.mubr.msk.f32.mxu1 %vm452_vm11, %v3043_v37 }
 0x3d5   :  { %2723 = vmatpush3.bf16.msra.mxu1 %v2720_v33  ;;  %2528 = vmatprep.mubr.msk.f32.mxu0 %vm452_vm11, %v3043_v37 }
 0x3d6   :  { %2725 = vmatprep.subr.bf16.mxu1 %v2724_v40  ;;  %2802 = vmatpush3.bf16.msra.mxu0 %v2801_v8 }
 0x3d7   :  { %2419 = vmatmul.mubr.msk.f32.gmra.mrb[18].mxu1 %vm452_vm11, %v3046_v38  ;;  %2803 = vmatprep.subr.bf16.mxu0 %v2901_v7 }
 0x3d8   :  { %2529 = vmatmul.mubr.msk.f32.gmra.mrb[22].mxu0 %vm452_vm11, %v3046_v38  ;;  %2459 = vmatprep.mubr.msk.f32.mxu1 %vm452_vm11, %v3029_v11 }
 0x3d9   :  { %2727 = vmatpush3.bf16.msra.mxu1 %v2724_v40  ;;  %2585 = vmatprep.mubr.msk.f32.mxu0 %vm2902_vm13, %v2897_v27  ;;  %vm1365_vm13 = vcmp.eq.s32.totalorder %v2948_v18, 7 }
 0x3da   :  { %2729 = vmatprep.subr.bf16.mxu1 %v2728_v43 }
 0x3dd   :  { %2731 = vmatpush3.bf16.msra.mxu1 %v2728_v43 }
 0x3de   :  { %2733 = vmatprep.subr.bf16.mxu1 %v2732_v39 }
 0x3e1   :  { %2735 = vmatpush3.bf16.msra.mxu1 %v2732_v39 }
 0x3e2   :  { %2753 = vmatprep.subr.bf16.mxu1 %v2752_v47 }
 0x3e4   :  { %2460 = vmatmul.mubr.msk.f32.vlgmr.msra.gmra.mrb[20].mxu1 %vm452_vm11, %v3032_v13 }
 0x3e5   :  { %2462 = vmatprep.mubr.msk.f32.mxu1 %vm452_vm11, %v3043_v37  ;;  %2755 = vmatpush3.bf16.msra.mxu1 %v2752_v47 }
 0x3e6   :  { %2757 = vmatprep.subr.bf16.mxu1 %v2756_v50 }
 0x3e8   :  { %2463 = vmatmul.mubr.msk.f32.gmra.mrb[22].mxu1 %vm452_vm11, %v3046_v38 }
 0x3e9   :  { %2759 = vmatpush3.bf16.msra.mxu1 %v2756_v50  ;;  %2503 = vmatprep.mubr.msk.f32.mxu1 %vm452_vm11, %v3029_v11 }
 0x3ea   :  { %2761 = vmatprep.subr.bf16.mxu1 %v2760_v53 }
 0x3ed   :  { %2763 = vmatpush3.bf16.msra.mxu1 %v2760_v53 }
 0x3ee   :  { %2765 = vmatprep.subr.bf16.mxu1 %v2764_v56 }
 0x3f1   :  { %2767 = vmatpush3.bf16.msra.mxu1 %v2764_v56 }
 0x3f2   :  { %2785 = vmatprep.subr.bf16.mxu1 %v2784_v59 }
 0x3f4   :  { %2504 = vmatmul.mubr.msk.f32.vlgmr.msra.gmra.mrb[24].mxu1 %vm452_vm11, %v3032_v13 }
 0x3f5   :  { %2506 = vmatprep.mubr.msk.f32.mxu1 %vm452_vm11, %v3043_v37  ;;  %2787 = vmatpush3.bf16.msra.mxu1 %v2784_v59 }
 0x3f6   :  { %2789 = vmatprep.subr.bf16.mxu1 %v2788_v62 }
 0x3f8   :  { %2507 = vmatmul.mubr.msk.f32.gmra.mrb[26].mxu1 %vm452_vm11, %v3046_v38 }
 0x3f9   :  { %2791 = vmatpush3.bf16.msra.mxu1 %v2788_v62  ;;  %2547 = vmatprep.mubr.msk.f32.mxu1 %vm452_vm11, %v3029_v11  ;;  %v1859_v11 = vld [vmem:[#allocation2 + $0x388] sm:$0xff] }
 0x3fa   :  { %2793 = vmatprep.subr.bf16.mxu1 %v2792_v1  ;;  %v2804_v10 = vpack.c.bf16 %v1860_v9, %v1859_v11 }
 0x3fc   :  { %2805 = vmatpush3.bf16.msra.mxu0 %v2804_v10 }
 0x3fd   :  { %2795 = vmatpush3.bf16.msra.mxu1 %v2792_v1  ;;  %2806 = vmatprep.subr.bf16.mxu0 %v2901_v7 }
 0x3fe   :  { %2797 = vmatprep.subr.bf16.mxu1 %v2796_v4 }
 0x401   :  { %2799 = vmatpush3.bf16.msra.mxu1 %v2796_v4 }
 0x404   :  { %2548 = vmatmul.mubr.msk.f32.vlgmr.msra.gmra.mrb[28].mxu1 %vm452_vm11, %v3032_v13  ;;  %v1862_v13 = vld [vmem:[#allocation2 + $0x3a0] sm:$0xff] }
 0x405   :  { %2550 = vmatprep.mubr.msk.f32.mxu1 %vm452_vm11, %v3043_v37  ;;  %v2807_v16 = vpack.c.bf16 %v1862_v13, %v1861_v15  ;;  %v1863_v37 = vld [vmem:[#allocation2 + $0x3a8] sm:$0xff] }
 0x407   :  { %2808 = vmatpush3.bf16.msra.mxu0 %v2807_v16 }
 0x408   :  { %2551 = vmatmul.mubr.msk.f32.gmra.mrb[30].mxu1 %vm452_vm11, %v3046_v38  ;;  %2809 = vmatprep.subr.bf16.mxu0 %v2901_v7  ;;  %v2810_v38 = vpack.c.bf16 %v1864_v17, %v1863_v37 }
 0x40b   :  { %2811 = vmatpush3.bf16.msra.mxu0 %v2810_v38 }
 0x40c   :  { %2812 = vmatprep.subr.bf16.mxu0 %v2901_v7 }
 0x40f   :  { %2814 = vmatpush3.bf16.msra.mxu0 %v2813_v22 }
 0x410   :  { %2815 = vmatprep.subr.bf16.mxu0 %v2901_v7 }
 0x413   :  { %2817 = vmatpush3.bf16.msra.mxu0 %v2816_v25 }
 0x414   :  { %2818 = vmatprep.subr.bf16.mxu0 %v2901_v7 }
 0x417   :  { %2820 = vmatpush3.bf16.msra.mxu0 %v2819_v26 }
 0x418   :  { %2821 = vmatprep.subr.bf16.mxu0 %v2901_v7 }
 0x41b   :  { %2823 = vmatpush3.bf16.msra.mxu0 %v2822_v32 }
 0x475   :  { %v2329_v33 = vpop.f32.mrb[4].mxu1  ;;  %v2395_v34 = vpop.f32.mrb[8].mxu0 }
 0x476   :  { %v666_v35 = vpop.f32.mrb[5].mxu1  ;;  %v1005_v40 = vpop.f32.mrb[9].mxu0 }
 0x477   :  { %v697_v47 = vsel %vm685_vm14, %v666_v35, 0.0  ;;  %v1036_v62 = vsel %vm1024_vm3, %v1005_v40, 0.0  ;;  %vm1477_vm14 = vcmp.eq.s32.totalorder %v2944_v12, 8  ;;  %vm1705_vm3 = vcmp.eq.s32.totalorder %v2951_v20, 10 }
 0x47d   :  { %v2332_v41 = vpop.f32.mrb[6].mxu1  ;;  %v2398_v42 = vpop.f32.mrb[10].mxu0 }
 0x47e   :  { %v676_v43 = vpop.f32.mrb[7].mxu1  ;;  %v1015_v44 = vpop.f32.mrb[11].mxu0 }
 0x47f   :  { %v699_v53 = vsel %vm687_vm0, %v676_v43, 0.0  ;;  %v1038_v6 = vsel %vm1026_vm5, %v1015_v44, 0.0  ;;  %vm1703_vm0 = vcmp.eq.s32.totalorder %v2944_v12, 10  ;;  %vm1818_vm5 = vcmp.eq.s32.totalorder %v2951_v20, 11 }
 0x485   :  { %v2351_v36 = vpop.f32.mrb[8].mxu1  ;;  %v2439_v39 = vpop.f32.mrb[12].mxu0 }
 0x486   :  { %v779_v45 = vpop.f32.mrb[9].mxu1  ;;  %v1231_v46 = vpop.f32.mrb[13].mxu0 }
 0x487   :  { %v810_v48 = vsel %vm798_vm15, %v779_v45, 0.0  ;;  %v1262_v16 = vsel %vm1250_vm8, %v1231_v46, 0.0  ;;  %vm1590_vm15 = vcmp.eq.s32.totalorder %v2944_v12, 9 }
 0x488   :  { %v814_v27 = vadd.f32 %v810_v48, %v697_v47 }
 0x489   :  { %v2354_v49 = vpop.f32.mrb[10].mxu1  ;;  %v2442_v50 = vpop.f32.mrb[14].mxu0 }
 0x48a   :  { %v789_v51 = vpop.f32.mrb[11].mxu1  ;;  %v1241_v52 = vpop.f32.mrb[15].mxu0 }
 0x48b   :  { %v812_v54 = vsel %vm800_vm1, %v789_v51, 0.0  ;;  %v1264_v24 = vsel %vm1252_vm10, %v1241_v52, 0.0  ;;  %vm1479_vm1 = vcmp.eq.s32.totalorder %v2951_v20, 8 }
 0x48c   :  { %v816_v55 = vadd.f32 %v812_v54, %v699_v53 }
 0x495   :  { %v2373_v56 = vpop.f32.mrb[12].mxu1 }
 0x496   :  { %v2483_v57 = vpop.f32.mrb[16].mxu0  ;;  %v892_v58 = vpop.f32.mrb[13].mxu1 }
 0x497   :  { %v923_v59 = vsel %vm911_vm2, %v892_v58, 0.0  ;;  %v1457_v60 = vpop.f32.mrb[17].mxu0  ;;  %v1489_v40 = vsel %vm1477_vm14, %v2483_v57, 0.0  ;;  %vm1592_vm2 = vcmp.eq.s32.totalorder %v2951_v20, 9 }
 0x498   :  { %v927_v61 = vadd.f32 %v923_v59, %v814_v27 }
 0x499   :  { %v2376_v63 = vpop.f32.mrb[14].mxu1 }
 0x49a   :  { %v2486_v0 = vpop.f32.mrb[18].mxu0  ;;  %v902_v1 = vpop.f32.mrb[15].mxu1  ;;  %v1040_v2 = vadd.f32 %v1036_v62, %v927_v61 }
 0x49b   :  { %v925_v3 = vsel %vm913_vm4, %v902_v1, 0.0  ;;  %v1467_v4 = vpop.f32.mrb[19].mxu0  ;;  %v1491_v36 = vsel %vm1479_vm1, %v2486_v0, 0.0  ;;  %vm1816_vm4 = vcmp.eq.s32.totalorder %v2944_v12, 11 }
 0x49c   :  { %v929_v5 = vadd.f32 %v925_v3, %v816_v55 }
 0x49e   :  { %v1042_v7 = vadd.f32 %v1038_v6, %v929_v5  ;;  %v2073_v5 = vld [vmem:[#allocation2 + $0x370] ss:$0 sm:$0xff] }
 0x4a6   :  { %v2417_v8 = vpop.f32.mrb[16].mxu1 }
 0x4a7   :  { %v2527_v11 = vpop.f32.mrb[20].mxu0  ;;  %v1118_v9 = vpop.f32.mrb[17].mxu1  ;;  %v2074_v8 = vld [vmem:[#allocation2 + $0x3f8] ss:$0 sm:$0xff] }
 0x4a8   :  { %v1149_v10 = vsel %vm1137_vm6, %v1118_v9, 0.0  ;;  %v1683_v15 = vpop.f32.mrb[21].mxu0  ;;  %v1715_v18 = vsel %vm1703_vm0, %v2527_v11, 0.0 }
 0x4a9   :  { %v1153_v13 = vadd.f32 %v1149_v10, %v1040_v2 }
 0x4aa   :  { %v2420_v37 = vpop.f32.mrb[18].mxu1 }
 0x4ab   :  { %v2530_v17 = vpop.f32.mrb[22].mxu0  ;;  %v1128_v38 = vpop.f32.mrb[19].mxu1  ;;  %v1266_v19 = vadd.f32 %v1262_v16, %v1153_v13  ;;  %v1955_v16 = vld [vmem:[#allocation2 + $0x410] sm:$0x1] }
 0x4ac   :  { %v1151_v21 = vsel %vm1139_vm9, %v1128_v38, 0.0  ;;  %v1693_v22 = vpop.f32.mrb[23].mxu0  ;;  %v1717_v47 = vsel %vm1705_vm3, %v2530_v17, 0.0 }
 0x4ad   :  { %v1155_v23 = vadd.f32 %v1151_v21, %v1042_v7  ;;  %v2903_v21 = vmov 0   ;;  %v1960_v22 = vld [vmem:[#allocation2 + $0x418] sm:$0x1] }
 0x4ae   :  { %2835 = vset.pattern.permute.xlu0 %v2903_v21 }
 0x4af   :  { %v1268_v25 = vadd.f32 %v1264_v24, %v1155_v23 }
 0x4b7   :  { %v2461_v28 = vpop.f32.mrb[20].mxu1 }
 0x4b8   :  { %v1344_v31 = vpop.f32.mrb[21].mxu1 }
 0x4b9   :  { %v1375_v26 = vsel %vm1363_vm12, %v1344_v31, 0.0 }
 0x4ba   :  { %v1379_v29 = vadd.f32 %v1375_v26, %v1266_v19 }
 0x4bb   :  { %v2464_v30 = vpop.f32.mrb[22].mxu1 }
 0x4bc   :  { %v1354_v32 = vpop.f32.mrb[23].mxu1 }
 0x4bd   :  { %v1377_v33 = vsel %vm1365_vm13, %v1354_v32, 0.0 }
 0x4be   :  { %v1381_v34 = vadd.f32 %v1377_v33, %v1268_v25 }
 0x4c7   :  { %v2505_v35 = vpop.f32.mrb[24].mxu1 }
 0x4c8   :  { %v1602_v41 = vsel %vm1590_vm15, %v2505_v35, 0.0  ;;  %v1570_v14 = vpop.f32.mrb[25].mxu1  ;;  %v1978_v35 = vld [vmem:[#allocation2 + $0x400] sm:$0x1] }
 0x4c9   :  { %v1606_v42 = vadd.f32 %v1602_v41, %v1489_v40 }
 0x4cb   :  { %v2508_v43 = vpop.f32.mrb[26].mxu1  ;;  %v1719_v44 = vadd.f32 %v1715_v18, %v1606_v42  ;;  %v1984_v42 = vld [vmem:[#allocation2 + $0x408] sm:$0x1] }
 0x4cc   :  { %v1604_v39 = vsel %vm1592_vm2, %v2508_v43, 0.0  ;;  %v1580_v45 = vpop.f32.mrb[27].mxu1 }
 0x4cd   :  { %v1608_v46 = vadd.f32 %v1604_v39, %v1491_v36 }
 0x4cf   :  { %v1721_v48 = vadd.f32 %v1717_v47, %v1608_v46 }
 0x4d7   :  { %v2549_v27 = vpop.f32.mrb[28].mxu1 }
 0x4d8   :  { %v1828_v49 = vsel %vm1816_vm4, %v2549_v27, 0.0  ;;  %v1796_v50 = vpop.f32.mrb[29].mxu1 }
 0x4d9   :  { %v1832_v51 = vadd.f32 %v1828_v49, %v1719_v44 }
 0x4db   :  { %v1835_v52 = vadd.f32 %v1832_v51, %v1379_v29  ;;  %v2552_v53 = vpop.f32.mrb[30].mxu1 }
 0x4dc   :  { %v1830_v54 = vsel %vm1818_vm5, %v2552_v53, 0.0  ;;  %v1806_v55 = vpop.f32.mrb[31].mxu1 }
 0x4dd   :  { %v1836_v56 = vrot.slane %v1835_v52, 4  ;;  %v1834_v57 = vadd.f32 %v1830_v54, %v1721_v48 }
 0x4df   :  { %v1837_v58 = vadd.f32 %v1836_v56, %v1835_v52  ;;  %v1842_v59 = vadd.f32 %v1834_v57, %v1381_v34 }
 0x4e1   :  { %v1838_v60 = vrot.slane %v1837_v58, 2  ;;  %v1843_v61 = vrot.slane %v1842_v59, 4 }
 0x4e3   :  { %v1839_v62 = vadd.f32 %v1838_v60, %v1837_v58  ;;  %v1844_v63 = vadd.f32 %v1843_v61, %v1842_v59 }
 0x4e5   :  { %v1845_v0 = vrot.slane %v1844_v63, 2  ;;  %v1840_v12 = vrot.slane %v1839_v62, 1 }
 0x4e7   :  { %v1846_v1 = vadd.f32 %v1845_v0, %v1844_v63  ;;  %v1841_v3 = vadd.f32 %v1840_v12, %v1839_v62 }
 0x4e9   :  { %v1847_v2 = vrot.slane %v1846_v1, 1 }
 0x4eb   :  { %v1848_v4 = vadd.f32 %v1847_v2, %v1846_v1 }
 0x4ed   :  { %v1849_v20 = vsel %vm223_vm7, %v1841_v3, %v1848_v4 }
 0x4ee   :  { %v1855_v6 = vadd.f32 %v2073_v5, %v1849_v20 }
 0x4f0   :  { %v1856_v7 = vmax.f32 %v1855_v6, 0.0 }
 0x4f2   :  { %2586 = vmatmul.mubr.f32.vlgmr.msra.gmra.mrb[24].mxu0 %v1856_v7 }
 0x5c5   :  { %v1944_v11 = vpop.f32.mrb[24].mxu0 }
 0x5c6   :  { %v1945_v9 = vadd.f32 %v2074_v8, %v1944_v11  ;;  %v2587_v10 = vpop.f32.mrb[25].mxu0 }
 0x5c8   :  { %v1948_v15 = vmax.f32 %v1945_v9, 0.0 }
 0x5ca   :  { %v1950_v13 = vrot.slane %v1948_v15, 1 }
 0x5cc   :  { %1951 = vrot.lane.b32.xlu0 %v1950_v13, %s2900_s3  ;;  %v1970_v32 = vsub.f32 %v1948_v15, %v1950_v13 }
 0x5ce   :  { %v1971_v33 = vand.u32 2147483647, %v1970_v32 }
 0x63e   :  { %v1952_v37 = vpop.permute.xlu0 %1951 }
 0x63f   :  { %v1954_v17 = vsel %vm452_vm11, %v1948_v15, %v1952_v37  ;;  %vm1992_vm11 = vcmask 0  }
 0x640   :  { %v1956_v38 = vmul.f32 %v1955_v16, %v1954_v17 }
 0x642   :  { %v1957_v19 = vsel %vm223_vm7, %v1956_v38, 0.0  ;;  %vm1980_vm7 = vcmask 516096  }
 0x643   :  { %1958 = vadd.xlane.f32.xlu1 %v1957_v19 }
 0x6d0   :  { %v1959_v23 = vpop.xlane.xlu1 %1958 }
 0x6d1   :  { %v1961_v24 = vadd.f32 %v1960_v22, %v1959_v23 }
 0x6d3   :  { %2836 = vtanh.f32 %v1961_v24 }
 0x6dd   :  { %v2837_v25 = vpop.eup %2836 }
 0x6de   :  { %v1963_v28 = vsub.f32 %v2837_v25, %v2837_v25 }
 0x6e0   :  { %v1964_v31 = vmul.f32 1.442695, %v1963_v28 }
 0x6e2   :  { %2838 = vpow2.f32 %v1964_v31 }
 0x6ec   :  { %v2839_v26 = vpop.eup %2838 }
 0x6ed   :  { %2840 = vrcp.f32 %v2839_v26 }
 0x6f7   :  { %v2841_v29 = vpop.eup %2840 }
 0x6f8   :  { %v1968_v30 = vmul.f32 %v2841_v29, %v2839_v26 }
 0x6fa   :  { %1974 = vperm.xlu0 %2835, %v1968_v30  }
 0x779   :  { %v1975_v34 = vpop.permute.xlu0 %1974 }
 0x77a   :  { %v1977_v40 = vmul.f32 %v1975_v34, %v1971_v33 }
 0x77c   :  { %v1979_v41 = vmul.f32 %v1978_v35, %v1977_v40 }
 0x77e   :  { %v1981_v14 = vsel %vm1980_vm7, %v1979_v41, 0.0 }
 0x77f   :  { %1982 = vadd.xlane.f32.xlu0 %v1981_v14 }
 0x80c   :  { %v1983_v18 = vpop.xlane.xlu0 %1982 }
 0x80d   :  { %v1985_v43 = vadd.f32 %v1984_v42, %v1983_v18 }
 0x80f   :  { %v1986_v44 = vsub.f32 0.0, %v1985_v43 }
 0x811   :  { %v1987_v36 = vmul.f32 1.442695, %v1986_v44 }
 0x813   :  { %2842 = vpow2.f32 %v1987_v36 }
 0x81d   :  { %v2843_v39 = vpop.eup %2842 }
 0x81e   :  { %v1989_v45 = vadd.f32 1.0, %v2843_v39 }
 0x820   :  { %2844 = vrcp.f32 %v1989_v45 }
 0x82a   :  { %v2845_v46 = vpop.eup %2844 }
 0x82b   :  { %1993 = vst.msk [vmem:[#allocation5] sm:$0x1] %vm1992_vm11, %v2845_v46 }
 0x82c   :  { %2879 = shalt.err (!%p2876_p12)
}
 0x82d   :  { %s2880_s10 = scalar_lea.hbm %s3169_s2, 16 }
 0x82e   :  { %p2881_p13 = scmp.ne.s32.totalorder %s3169_s2, %s2880_s10  ;;  %p2884_p0 = scmp.lt.u32.totalorder %s2880_s10, %s3169_s2 }
 0x830   :  { %p2886_p1 = pnand %p2884_p0, %p2881_p13 }
 0x832   :  { %2889 = shalt.err (!%p2886_p1)
}
 0x833   :  { %2003 = dma.vmem_to_hbm [thread:$0]  %s2001_s5, 16, %s3169_s2, [#allocation4]  }
 0x834   :  { %2892 = dma.done.wait [#allocation4], 16  }
 0x835   :  { %2893 = vsyncadd [#allocation4], 4294967280 }
 0x836   :  { %2007 = vsyncpa [#allocation3], 1 }
 0x837   :  { %2008 = vsyncpa [#allocation4], 1 }

</bundles_post_ra>
